<compile_context>
chip_gen: v7x
topology: tpu7x:2x2x1
jax: 0.10.0
libtpu: 0.0.40
codegen_flags: <defaults>
</compile_context>

<pallas_src>
import jax
import jax.numpy as jnp
from jax.experimental import pallas as pl
from jax.experimental.pallas import tpu as pltpu

H_DIM = 32
N_STEPS = 9
NUM_LAYERS = 1
N_NEGS = 4
MEM_THR = 0.1
MAX_MEM_PASSES = 3
REG_PARAM = 1e-8

_COMPILER_PARAMS = pltpu.CompilerParams(vmem_limit_bytes=32 * 1024 * 1024)


# ---------------------------------------------------------------------------
# Shared LSTM recurrence (traced inside both kernels)
# ---------------------------------------------------------------------------
def _lstm_recurrence(x, lwih, lwhh, lb, B, H, T, emit):
    """x: (T*B, H) time-major. PyTorch gate order i|f|g|o, packed 128-wide.

    Calls emit(t, h) with the (B, H) hidden state of every step."""
    # Hoisted input projection for ALL timesteps (bias folded in once).
    xg = jnp.dot(x, lwih, preferred_element_type=jnp.float32) + lb     # (T*B, 4H)
    h = jnp.zeros((B, H), jnp.float32)
    c = jnp.zeros((B, H), jnp.float32)
    for t in range(T):                       # T = 9, static unroll
        g = xg[t * B:(t + 1) * B, :] + jnp.dot(
            h, lwhh, preferred_element_type=jnp.float32)               # (B, 4H)
        # Full-width nonlinearities, slice afterwards (2 EUP pushes, not 4).
        sg = jax.nn.sigmoid(g)
        tg = jnp.tanh(g)
        c = sg[:, H:2 * H] * c + sg[:, 0:H] * tg[:, 2 * H:3 * H]
        h = sg[:, 3 * H:4 * H] * jnp.tanh(c)
        emit(t, h)


# ---------------------------------------------------------------------------
# Kernel 1: LSTM only (mode='embeddings')
# ---------------------------------------------------------------------------
def _lstm_kernel(x_ref, lwih_ref, lwhh_ref, lb_ref, rnn_out_ref):
    B = rnn_out_ref.shape[0]
    H = lwih_ref.shape[0]
    T = rnn_out_ref.shape[1] // H

    def emit(t, h):
        # static lane offset store -- no hs list, no concat, no regalloc pressure
        rnn_out_ref[:, t * H:(t + 1) * H] = h

    _lstm_recurrence(x_ref[...], lwih_ref[...], lwhh_ref[...], lb_ref[...],
                     B, H, T, emit)


# ---------------------------------------------------------------------------
# Kernel 2: LSTM + memory_hops, scores only (mode='scores'/'loss')
# ---------------------------------------------------------------------------
def _lstm_memhop_kernel(x_ref,                       # (T*B, H) time-major inputs
                        lwih_ref, lwhh_ref, lb_ref,  # LSTM packed i|f|g|o
                        gwih_ref, gwhh_ref,          # GRU packed r|z|n (padded to 128)
                        gbih_ref, gbhh_ref,          # (1,128)
                        bdw_ref, bdb_ref,            # (T*H,128), (1,128) attn/score block-diag
                        vw_ref, vb_ref,              # (H,128), (1,128)  last-step attn/score
                        rep_ref, sum_ref,            # (T-1,(T-1)*H), ((T-1)*H,H) h_e MXU helpers
                        score_out_ref):              # (B, 1)
    B = score_out_ref.shape[0]
    H = lwih_ref.shape[0]
    T = bdw_ref.shape[0] // H

    # -------- LSTM -----------------------------------------------------------
    hs = []
    _lstm_recurrence(x_ref[...], lwih_ref[...], lwhh_ref[...], lb_ref[...],
                     B, H, T, lambda t, h: hs.append(h))
    # rnn slab stays in vregs/VMEM -- never written to HBM in this mode.
    rnn_flat = jnp.concatenate(hs, axis=1)                      # (B, T*H)

    # -------- memory_hops() --------------------------------------------------
    # attn logits (all T steps, bias of attns[-1] folded at col T-1) and score
    # logits (first T-1 steps) via one MXU matmul against a block-diag weight.
    logits = jnp.dot(rnn_flat, bdw_ref[...],
                     preferred_element_type=jnp.float32) + bdb_ref[...]    # (B, 128)
    attn_first = logits[:, 0:T - 1]                             # (B, T-1)
    attn_last = logits[:, T - 1:T]                              # (B, 1)  incl. bias
    score_first = logits[:, T:2 * T - 1]                        # (B, T-1)

    # first pass attention: hardtanh + softmax
    attn_ws = jax.nn.softmax(jnp.clip(attn_first + attn_last, -1.0, 1.0), axis=1)

    # h_e = bmm(attn_ws, rnn[:, :T-1, :]) as two constant MXU matmuls.
    ctx = rnn_flat[:, 0:(T - 1) * H]                            # (B, (T-1)*H)
    attn_rep = jnp.dot(attn_ws, rep_ref[...],
                       preferred_element_type=jnp.float32)      # (B, (T-1)*H)
    h_e = jnp.dot(attn_rep * ctx, sum_ref[...],
                  preferred_element_type=jnp.float32)           # (B, H)
    v = hs[T - 1]                                               # (B, H)

    gwih = gwih_ref[...]
    gwhh = gwhh_ref[...]
    gbih = gbih_ref[...]
    gbhh = gbhh_ref[...]

    # Bounded, masked unrolling of the data-dependent while loop
    # (while diff > mem_thr and count < max_mem_passes); diff is batch-global.
    active = jnp.ones((1, 1), jnp.float32)
    for _ in range(MAX_MEM_PASSES):
        gx = jnp.dot(h_e, gwih, preferred_element_type=jnp.float32) + gbih  # (B,128)
        gh = jnp.dot(v, gwhh, preferred_element_type=jnp.float32) + gbhh    # (B,128)
        sgate = jax.nn.sigmoid(gx + gh)                         # full-width sigmoid
        r = sgate[:, 0:H]
        z = sgate[:, H:2 * H]
        n = jnp.tanh(gx[:, 2 * H:3 * H] + r * gh[:, 2 * H:3 * H])  # b_hn stays inside r*(.)
        new_v = (1.0 - z) * n + z * v                           # GRU hidden update
        diff = jnp.sum(jnp.sum(jnp.abs(new_v - v), axis=1, keepdims=True),
                       axis=0, keepdims=True)                   # (1,1) batch-global L1
        upd = active > 0.5
        v = jnp.where(upd, new_v, v)
        h_e = jnp.where(upd, new_v, h_e)                        # seq-len-1 GRU: output == hidden
        active = active * (diff > MEM_THR).astype(jnp.float32)

    # second pass attention uses v_logits = attns[-1](v); last score from v.
    vcols = jnp.dot(v, vw_ref[...],
                    preferred_element_type=jnp.float32) + vb_ref[...]       # (B,128)
    v_logit = vcols[:, 0:1]                                     # attn_w[T-1]·v + attn_b
    score_last = vcols[:, 1:2]                                  # score_w[T-1]·v + score_b

    attn_ws2 = jax.nn.softmax(jnp.clip(attn_first + v_logit, -1.0, 1.0), axis=1)
    scores = jax.nn.sigmoid(score_first + score_last)           # (B, T-1)
    score_out_ref[...] = jnp.sum(attn_ws2 * scores, axis=1, keepdims=True)  # (B, 1)


# ---------------------------------------------------------------------------
# Pallas wrappers
# ---------------------------------------------------------------------------
def _vmem():
    return pl.BlockSpec(memory_space=pltpu.MemorySpace.VMEM)


def lstm_embeddings(x_tm, kp, B):
    """LSTM only. x_tm: (T*B, H) time-major. Returns (B, T, H)."""
    T, H = N_STEPS, H_DIM
    rnn_flat = pl.pallas_call(
        _lstm_kernel,
        out_shape=jax.ShapeDtypeStruct((B, T * H), jnp.float32),
        in_specs=[_vmem()] * 4,
        out_specs=_vmem(),
        compiler_params=_COMPILER_PARAMS,
    )(x_tm, kp['lwih'], kp['lwhh'], kp['lb'])
    return rnn_flat.reshape(B, T, H)


def lstm_memhop_scores(x_tm, kp, B):
    """LSTM + memory_hops, scores only (no rnn_out HBM writeback). Returns (B,)."""
    scores = pl.pallas_call(
        _lstm_memhop_kernel,
        out_shape=jax.ShapeDtypeStruct((B, 1), jnp.float32),
        in_specs=[_vmem()] * 14,
        out_specs=_vmem(),
        compiler_params=_COMPILER_PARAMS,
    )(x_tm, kp['lwih'], kp['lwhh'], kp['lb'],
      kp['gwih'], kp['gwhh'], kp['gbih'], kp['gbhh'],
      kp['bdw'], kp['bdb'], kp['vw'], kp['vb'],
      kp['rep'], kp['summ'])
    return scores[:, 0]


# ---------------------------------------------------------------------------
# Parameters (deterministic synthetic init; shapes follow the PyTorch module)
# ---------------------------------------------------------------------------
def init_params(key):
    ks = jax.random.split(key, 12)
    s = 0.1
    H, T = H_DIM, N_STEPS
    return {
        # nn.LSTM(h_dim, h_dim): gates packed column-wise [i | f | g | o]
        'lstm_wih': s * jax.random.normal(ks[0], (H, 4 * H), jnp.float32),
        'lstm_whh': s * jax.random.normal(ks[1], (H, 4 * H), jnp.float32),
        'lstm_bih': s * jax.random.normal(ks[2], (1, 4 * H), jnp.float32),
        'lstm_bhh': s * jax.random.normal(ks[3], (1, 4 * H), jnp.float32),
        # nn.GRU(h_dim, h_dim): gates packed column-wise [r | z | n]
        'gru_wih': s * jax.random.normal(ks[4], (H, 3 * H), jnp.float32),
        'gru_whh': s * jax.random.normal(ks[5], (H, 3 * H), jnp.float32),
        'gru_bih': s * jax.random.normal(ks[6], (1, 3 * H), jnp.float32),
        'gru_bhh': s * jax.random.normal(ks[7], (1, 3 * H), jnp.float32),
        # attns / score_layers: n_steps x Linear(H, 1); bias only on the last one
        'attn_w': s * jax.random.normal(ks[8], (T, H), jnp.float32),
        'attn_b': s * jax.random.normal(ks[9], (), jnp.float32),
        'score_w': s * jax.random.normal(ks[10], (T, H), jnp.float32),
        'score_b': s * jax.random.normal(ks[11], (), jnp.float32),
    }


def pack_kernel_params(p):
    """Pack module params into lane-dense (128-wide) kernel operands."""
    H, T = H_DIM, N_STEPS
    W = 4 * H                     # 128-lane slab width
    pad3 = W - 3 * H              # pad GRU gates 96 -> 128

    # block-diagonal attn (cols 0..T-1) + score (cols T..2T-2) weights
    eye_t = jnp.eye(T, dtype=jnp.float32)
    attn_bd = (p['attn_w'][:, :, None] * eye_t[:, None, :]).reshape(T * H, T)
    eye_tm1 = jnp.eye(T - 1, dtype=jnp.float32)
    score_bd = (p['score_w'][:T - 1, :, None] * eye_tm1[:, None, :]
                ).reshape((T - 1) * H, T - 1)
    score_bd = jnp.concatenate(
        [score_bd, jnp.zeros((H, T - 1), jnp.float32)], axis=0)
    bdw = jnp.concatenate(
        [attn_bd, score_bd, jnp.zeros((T * H, W - (2 * T - 1)), jnp.float32)],
        axis=1)                                                # (T*H, 128)
    bdb = jnp.zeros((1, W), jnp.float32).at[0, T - 1].set(p['attn_b'])

    vw = jnp.pad(jnp.stack([p['attn_w'][T - 1], p['score_w'][T - 1]], axis=1),
                 ((0, 0), (0, W - 2)))                         # (H, 128)
    vb = (jnp.zeros((1, W), jnp.float32)
          .at[0, 0].set(p['attn_b'])
          .at[0, 1].set(p['score_b']))

    # constant matrices for the MXU-ified h_e accumulation:
    #   rep[i, i*H:(i+1)*H] = 1    (broadcast attn weight i across H lanes)
    #   summ[i*H+d, d]      = 1    (sum the weighted context blocks)
    rep = jnp.kron(jnp.eye(T - 1, dtype=jnp.float32),
                   jnp.ones((1, H), jnp.float32))              # (T-1, (T-1)*H)
    summ = jnp.tile(jnp.eye(H, dtype=jnp.float32), (T - 1, 1)) # ((T-1)*H, H)

    return {
        'lwih': p['lstm_wih'],
        'lwhh': p['lstm_whh'],
        'lb': p['lstm_bih'] + p['lstm_bhh'],
        'gwih': jnp.pad(p['gru_wih'], ((0, 0), (0, pad3))),
        'gwhh': jnp.pad(p['gru_whh'], ((0, 0), (0, pad3))),
        'gbih': jnp.pad(p['gru_bih'], ((0, 0), (0, pad3))),
        'gbhh': jnp.pad(p['gru_bhh'], ((0, 0), (0, pad3))),
        'bdw': bdw, 'bdb': bdb, 'vw': vw, 'vb': vb,
        'rep': rep, 'summ': summ,
    }


# ---------------------------------------------------------------------------
# Plain-JAX glue replicating BertEventMemory.forward (minus the BERT encoder)
# ---------------------------------------------------------------------------
def bert_event_memory_forward(params, kparams, instance_embs, nid2rows,
                              coref_nids, neg_coref_nids, n_instances,
                              mode='scores'):
    batch_size = len(nid2rows)
    n_choices = neg_coref_nids[0].shape[0] + 1

    # ---- vectorized node merge (mean of valid instance rows per node) -------
    offsets = [0]
    for n in n_instances[:-1]:
        offsets.append(offsets[-1] + n)
    off = jnp.asarray(offsets, jnp.int32)[:, None, None]
    nid2rows_s = jnp.stack(nid2rows)                           # (bs, nodes, max_rows)
    mask = nid2rows_s >= 0                                     # -1 == padding
    gidx = jnp.where(mask, nid2rows_s + off, 0)
    gathered = instance_embs[gidx]                             # (bs, nodes, rows, H)
    summed = jnp.sum(gathered * mask[..., None].astype(instance_embs.dtype), axis=2)
    counts = jnp.maximum(jnp.sum(mask, axis=2, keepdims=True), 1)
    node_embs = summed / counts.astype(instance_embs.dtype)    # (bs, nodes, H)

    # ---- build (context, choice) sequences; gather DIRECTLY time-major ------
    coref = jnp.stack(coref_nids)                              # (bs, n_steps)
    negs = jnp.stack(neg_coref_nids)                           # (bs, n_negs)
    context = jnp.broadcast_to(coref[:, None, :-1],
                               (batch_size, n_choices, N_STEPS - 1))
    choices = jnp.concatenate([coref[:, -1:], negs], axis=1)[:, :, None]
    inputs = jnp.concatenate([context, choices], axis=2)       # (bs, n_choices, T) node ids

    B = batch_size * n_choices
    # Only the tiny int32 index arrays are permuted; the O(B*T*H) gather output
    # is produced already in time-major (T, B, H) order -> no host transpose.
    node_idx_tm = jnp.transpose(inputs.reshape(B, N_STEPS))    # (T, B)
    batch_idx_tm = jnp.broadcast_to(
        jnp.repeat(jnp.arange(batch_size), n_choices)[None, :], (N_STEPS, B))
    x_tm = node_embs[batch_idx_tm, node_idx_tm].reshape(N_STEPS * B, H_DIM)

    # ---- fused Pallas kernels ------------------------------------------------
    if mode == 'embeddings':
        return lstm_embeddings(x_tm, kparams, B)               # (B, T, H)

    weighted_scores = lstm_memhop_scores(x_tm, kparams, B)     # (B,)
    ys = (jnp.arange(B) % n_choices == 0).astype(jnp.float32)

    if mode == 'loss':
        w = ys * (N_NEGS - 1) + 1.0
        eps = 1e-7
        p = jnp.clip(weighted_scores, eps, 1.0 - eps)
        bce = jnp.mean(w * -(ys * jnp.log(p) + (1.0 - ys) * jnp.log(1.0 - p)))
        reg = REG_PARAM * sum(jnp.sum(x ** 2)
                              for x in jax.tree_util.tree_leaves(params))
        return bce + reg

    return weighted_scores, ys


# ---------------------------------------------------------------------------
if __name__ == "__main__":
    key = jax.random.PRNGKey(0)
    pkey, ekey = jax.random.split(key)
    params = init_params(pkey)
    kparams = pack_kernel_params(params)

    batch_size = 2
    num_nodes = 12
    n_instances = [15, 15]
    total_instances = sum(n_instances)

    # synthetic stand-in for BERTNarrativeGraph output embeddings
    instance_embs = jax.random.normal(ekey, (total_instances, H_DIM), jnp.float32)

    nid2rows = []
    for i in range(batch_size):
        rows = []
        for nid in range(num_nodes):
            third = (3 * nid) % n_instances[i] if nid % 2 == 0 else -1
            rows.append([nid % n_instances[i], (2 * nid + 1) % n_instances[i], third])
        nid2rows.append(jnp.array(rows, jnp.int32))

    coref_nids = [jnp.array([(j * (i + 2)) % num_nodes for j in range(N_STEPS)],
                            jnp.int32) for i in range(batch_size)]
    neg_coref_nids = [jnp.array([(3 * j + i + 1) % num_nodes for j in range(N_NEGS)],
                                jnp.int32) for i in range(batch_size)]

    rnn_out = bert_event_memory_forward(params, kparams, instance_embs, nid2rows,
                                        coref_nids, neg_coref_nids, n_instances,
                                        mode='embeddings')
    scores, ys = bert_event_memory_forward(params, kparams, instance_embs, nid2rows,
                                           coref_nids, neg_coref_nids, n_instances,
                                           mode='scores')
    loss = bert_event_memory_forward(params, kparams, instance_embs, nid2rows,
                                     coref_nids, neg_coref_nids, n_instances,
                                     mode='loss')
    jax.block_until_ready((rnn_out, scores, ys, loss))
    print("KERNEL_OK")
</pallas_src>

<mosaic_0001>
module attributes {stable_mosaic.version = 11 : i64} {
  func.func @_lstm_kernel(%arg0: memref<90x32xf32, #tpu.memory_space<vmem>>, %arg1: memref<32x128xf32, #tpu.memory_space<vmem>>, %arg2: memref<32x128xf32, #tpu.memory_space<vmem>>, %arg3: memref<1x128xf32, #tpu.memory_space<vmem>>, %arg4: memref<10x288xf32, #tpu.memory_space<vmem>>) attributes {dimension_semantics = [], scalar_prefetch = 0 : i64, scratch_operands = 0 : i64, tpu.core_type = #tpu.core_type<tc>} {
    %c0 = arith.constant 0 : index
    %c0_0 = arith.constant 0 : index
    %0 = vector.load %arg0[%c0, %c0_0] : memref<90x32xf32, #tpu.memory_space<vmem>>, vector<90x32xf32>
    %c0_1 = arith.constant 0 : index
    %c0_2 = arith.constant 0 : index
    %1 = vector.load %arg1[%c0_1, %c0_2] : memref<32x128xf32, #tpu.memory_space<vmem>>, vector<32x128xf32>
    %c0_3 = arith.constant 0 : index
    %c0_4 = arith.constant 0 : index
    %2 = vector.load %arg2[%c0_3, %c0_4] : memref<32x128xf32, #tpu.memory_space<vmem>>, vector<32x128xf32>
    %c0_5 = arith.constant 0 : index
    %c0_6 = arith.constant 0 : index
    %3 = vector.load %arg3[%c0_5, %c0_6] : memref<1x128xf32, #tpu.memory_space<vmem>>, vector<1x128xf32>
    %cst = arith.constant dense<0.000000e+00> : vector<90x128xf32>
    %4 = tpu.matmul %0, %1, %cst {dimension_numbers = #tpu.dot_dimension_numbers<[1], [0], [0], [1], [0, 0, 1, 1], [], []>} : vector<90x32xf32>, vector<32x128xf32>, vector<90x128xf32> -> vector<90x128xf32>
    %5 = vector.broadcast %3 : vector<1x128xf32> to vector<90x128xf32>
    %6 = arith.addf %4, %5 : vector<90x128xf32>
    %cst_7 = arith.constant 0.000000e+00 : f32
    %7 = vector.broadcast %cst_7 : f32 to vector<10x32xf32>
    %cst_8 = arith.constant 0.000000e+00 : f32
    %8 = vector.broadcast %cst_8 : f32 to vector<10x32xf32>
    %9 = vector.extract_strided_slice %6 {offsets = [0, 0], sizes = [10, 128], strides = [1, 1]} : vector<90x128xf32> to vector<10x128xf32>
    %cst_9 = arith.constant dense<0.000000e+00> : vector<10x128xf32>
    %10 = tpu.matmul %7, %2, %cst_9 {dimension_numbers = #tpu.dot_dimension_numbers<[1], [0], [0], [1], [0, 0, 1, 1], [], []>} : vector<10x32xf32>, vector<32x128xf32>, vector<10x128xf32> -> vector<10x128xf32>
    %11 = arith.addf %9, %10 : vector<10x128xf32>
    %12 = arith.negf %11 : vector<10x128xf32>
    %13 = math.exp %12 : vector<10x128xf32>
    %cst_10 = arith.constant 1.000000e+00 : f32
    %14 = vector.broadcast %cst_10 : f32 to vector<10x128xf32>
    %15 = arith.addf %14, %13 : vector<10x128xf32>
    %16 = arith.divf %14, %15 : vector<10x128xf32>
    %17 = math.tanh %11 : vector<10x128xf32>
    %18 = vector.extract_strided_slice %16 {offsets = [0, 32], sizes = [10, 32], strides = [1, 1]} : vector<10x128xf32> to vector<10x32xf32>
    %19 = arith.mulf %18, %8 : vector<10x32xf32>
    %20 = vector.extract_strided_slice %16 {offsets = [0, 0], sizes = [10, 32], strides = [1, 1]} : vector<10x128xf32> to vector<10x32xf32>
    %21 = vector.extract_strided_slice %17 {offsets = [0, 64], sizes = [10, 32], strides = [1, 1]} : vector<10x128xf32> to vector<10x32xf32>
    %22 = arith.mulf %20, %21 : vector<10x32xf32>
    %23 = arith.addf %19, %22 : vector<10x32xf32>
    %24 = vector.extract_strided_slice %16 {offsets = [0, 96], sizes = [10, 32], strides = [1, 1]} : vector<10x128xf32> to vector<10x32xf32>
    %25 = math.tanh %23 : vector<10x32xf32>
    %26 = arith.mulf %24, %25 : vector<10x32xf32>
    %c0_11 = arith.constant 0 : index
    %c0_12 = arith.constant 0 : index
    %27 = vector.load %arg4[%c0_11, %c0_12] : memref<10x288xf32, #tpu.memory_space<vmem>>, vector<10x32xf32>
    tpu.vector_store %arg4[%c0_11, %c0_12], %26 {strides = array<i32>} : memref<10x288xf32, #tpu.memory_space<vmem>>, vector<10x32xf32>,
    %28 = vector.extract_strided_slice %6 {offsets = [10, 0], sizes = [10, 128], strides = [1, 1]} : vector<90x128xf32> to vector<10x128xf32>
    %cst_13 = arith.constant dense<0.000000e+00> : vector<10x128xf32>
    %29 = tpu.matmul %26, %2, %cst_13 {dimension_numbers = #tpu.dot_dimension_numbers<[1], [0], [0], [1], [0, 0, 1, 1], [], []>} : vector<10x32xf32>, vector<32x128xf32>, vector<10x128xf32> -> vector<10x128xf32>
    %30 = arith.addf %28, %29 : vector<10x128xf32>
    %31 = arith.negf %30 : vector<10x128xf32>
    %32 = math.exp %31 : vector<10x128xf32>
    %cst_14 = arith.constant 1.000000e+00 : f32
    %33 = vector.broadcast %cst_14 : f32 to vector<10x128xf32>
    %34 = arith.addf %33, %32 : vector<10x128xf32>
    %35 = arith.divf %33, %34 : vector<10x128xf32>
    %36 = math.tanh %30 : vector<10x128xf32>
    %37 = vector.extract_strided_slice %35 {offsets = [0, 32], sizes = [10, 32], strides = [1, 1]} : vector<10x128xf32> to vector<10x32xf32>
    %38 = arith.mulf %37, %23 : vector<10x32xf32>
    %39 = vector.extract_strided_slice %35 {offsets = [0, 0], sizes = [10, 32], strides = [1, 1]} : vector<10x128xf32> to vector<10x32xf32>
    %40 = vector.extract_strided_slice %36 {offsets = [0, 64], sizes = [10, 32], strides = [1, 1]} : vector<10x128xf32> to vector<10x32xf32>
    %41 = arith.mulf %39, %40 : vector<10x32xf32>
    %42 = arith.addf %38, %41 : vector<10x32xf32>
    %43 = vector.extract_strided_slice %35 {offsets = [0, 96], sizes = [10, 32], strides = [1, 1]} : vector<10x128xf32> to vector<10x32xf32>
    %44 = math.tanh %42 : vector<10x32xf32>
    %45 = arith.mulf %43, %44 : vector<10x32xf32>
    %c0_15 = arith.constant 0 : index
    %c32 = arith.constant 32 : index
    %46 = vector.load %arg4[%c0_15, %c32] : memref<10x288xf32, #tpu.memory_space<vmem>>, vector<10x32xf32>
    tpu.vector_store %arg4[%c0_15, %c32], %45 {strides = array<i32>} : memref<10x288xf32, #tpu.memory_space<vmem>>, vector<10x32xf32>,
    %47 = vector.extract_strided_slice %6 {offsets = [20, 0], sizes = [10, 128], strides = [1, 1]} : vector<90x128xf32> to vector<10x128xf32>
    %cst_16 = arith.constant dense<0.000000e+00> : vector<10x128xf32>
    %48 = tpu.matmul %45, %2, %cst_16 {dimension_numbers = #tpu.dot_dimension_numbers<[1], [0], [0], [1], [0, 0, 1, 1], [], []>} : vector<10x32xf32>, vector<32x128xf32>, vector<10x128xf32> -> vector<10x128xf32>
    %49 = arith.addf %47, %48 : vector<10x128xf32>
    %50 = arith.negf %49 : vector<10x128xf32>
    %51 = math.exp %50 : vector<10x128xf32>
    %cst_17 = arith.constant 1.000000e+00 : f32
    %52 = vector.broadcast %cst_17 : f32 to vector<10x128xf32>
    %53 = arith.addf %52, %51 : vector<10x128xf32>
    %54 = arith.divf %52, %53 : vector<10x128xf32>
    %55 = math.tanh %49 : vector<10x128xf32>
    %56 = vector.extract_strided_slice %54 {offsets = [0, 32], sizes = [10, 32], strides = [1, 1]} : vector<10x128xf32> to vector<10x32xf32>
    %57 = arith.mulf %56, %42 : vector<10x32xf32>
    %58 = vector.extract_strided_slice %54 {offsets = [0, 0], sizes = [10, 32], strides = [1, 1]} : vector<10x128xf32> to vector<10x32xf32>
    %59 = vector.extract_strided_slice %55 {offsets = [0, 64], sizes = [10, 32], strides = [1, 1]} : vector<10x128xf32> to vector<10x32xf32>
    %60 = arith.mulf %58, %59 : vector<10x32xf32>
    %61 = arith.addf %57, %60 : vector<10x32xf32>
    %62 = vector.extract_strided_slice %54 {offsets = [0, 96], sizes = [10, 32], strides = [1, 1]} : vector<10x128xf32> to vector<10x32xf32>
    %63 = math.tanh %61 : vector<10x32xf32>
    %64 = arith.mulf %62, %63 : vector<10x32xf32>
    %c0_18 = arith.constant 0 : index
    %c64 = arith.constant 64 : index
    %65 = vector.load %arg4[%c0_18, %c64] : memref<10x288xf32, #tpu.memory_space<vmem>>, vector<10x32xf32>
    tpu.vector_store %arg4[%c0_18, %c64], %64 {strides = array<i32>} : memref<10x288xf32, #tpu.memory_space<vmem>>, vector<10x32xf32>,
    %66 = vector.extract_strided_slice %6 {offsets = [30, 0], sizes = [10, 128], strides = [1, 1]} : vector<90x128xf32> to vector<10x128xf32>
    %cst_19 = arith.constant dense<0.000000e+00> : vector<10x128xf32>
    %67 = tpu.matmul %64, %2, %cst_19 {dimension_numbers = #tpu.dot_dimension_numbers<[1], [0], [0], [1], [0, 0, 1, 1], [], []>} : vector<10x32xf32>, vector<32x128xf32>, vector<10x128xf32> -> vector<10x128xf32>
    %68 = arith.addf %66, %67 : vector<10x128xf32>
    %69 = arith.negf %68 : vector<10x128xf32>
    %70 = math.exp %69 : vector<10x128xf32>
    %cst_20 = arith.constant 1.000000e+00 : f32
    %71 = vector.broadcast %cst_20 : f32 to vector<10x128xf32>
    %72 = arith.addf %71, %70 : vector<10x128xf32>
    %73 = arith.divf %71, %72 : vector<10x128xf32>
    %74 = math.tanh %68 : vector<10x128xf32>
    %75 = vector.extract_strided_slice %73 {offsets = [0, 32], sizes = [10, 32], strides = [1, 1]} : vector<10x128xf32> to vector<10x32xf32>
    %76 = arith.mulf %75, %61 : vector<10x32xf32>
    %77 = vector.extract_strided_slice %73 {offsets = [0, 0], sizes = [10, 32], strides = [1, 1]} : vector<10x128xf32> to vector<10x32xf32>
    %78 = vector.extract_strided_slice %74 {offsets = [0, 64], sizes = [10, 32], strides = [1, 1]} : vector<10x128xf32> to vector<10x32xf32>
    %79 = arith.mulf %77, %78 : vector<10x32xf32>
    %80 = arith.addf %76, %79 : vector<10x32xf32>
    %81 = vector.extract_strided_slice %73 {offsets = [0, 96], sizes = [10, 32], strides = [1, 1]} : vector<10x128xf32> to vector<10x32xf32>
    %82 = math.tanh %80 : vector<10x32xf32>
    %83 = arith.mulf %81, %82 : vector<10x32xf32>
    %c0_21 = arith.constant 0 : index
    %c96 = arith.constant 96 : index
    %84 = vector.load %arg4[%c0_21, %c96] : memref<10x288xf32, #tpu.memory_space<vmem>>, vector<10x32xf32>
    tpu.vector_store %arg4[%c0_21, %c96], %83 {strides = array<i32>} : memref<10x288xf32, #tpu.memory_space<vmem>>, vector<10x32xf32>,
    %85 = vector.extract_strided_slice %6 {offsets = [40, 0], sizes = [10, 128], strides = [1, 1]} : vector<90x128xf32> to vector<10x128xf32>
    %cst_22 = arith.constant dense<0.000000e+00> : vector<10x128xf32>
    %86 = tpu.matmul %83, %2, %cst_22 {dimension_numbers = #tpu.dot_dimension_numbers<[1], [0], [0], [1], [0, 0, 1, 1], [], []>} : vector<10x32xf32>, vector<32x128xf32>, vector<10x128xf32> -> vector<10x128xf32>
    %87 = arith.addf %85, %86 : vector<10x128xf32>
    %88 = arith.negf %87 : vector<10x128xf32>
    %89 = math.exp %88 : vector<10x128xf32>
    %cst_23 = arith.constant 1.000000e+00 : f32
    %90 = vector.broadcast %cst_23 : f32 to vector<10x128xf32>
    %91 = arith.addf %90, %89 : vector<10x128xf32>
    %92 = arith.divf %90, %91 : vector<10x128xf32>
    %93 = math.tanh %87 : vector<10x128xf32>
    %94 = vector.extract_strided_slice %92 {offsets = [0, 32], sizes = [10, 32], strides = [1, 1]} : vector<10x128xf32> to vector<10x32xf32>
    %95 = arith.mulf %94, %80 : vector<10x32xf32>
    %96 = vector.extract_strided_slice %92 {offsets = [0, 0], sizes = [10, 32], strides = [1, 1]} : vector<10x128xf32> to vector<10x32xf32>
    %97 = vector.extract_strided_slice %93 {offsets = [0, 64], sizes = [10, 32], strides = [1, 1]} : vector<10x128xf32> to vector<10x32xf32>
    %98 = arith.mulf %96, %97 : vector<10x32xf32>
    %99 = arith.addf %95, %98 : vector<10x32xf32>
    %100 = vector.extract_strided_slice %92 {offsets = [0, 96], sizes = [10, 32], strides = [1, 1]} : vector<10x128xf32> to vector<10x32xf32>
    %101 = math.tanh %99 : vector<10x32xf32>
    %102 = arith.mulf %100, %101 : vector<10x32xf32>
    %c0_24 = arith.constant 0 : index
    %c128 = arith.constant 128 : index
    %103 = vector.load %arg4[%c0_24, %c128] : memref<10x288xf32, #tpu.memory_space<vmem>>, vector<10x32xf32>
    tpu.vector_store %arg4[%c0_24, %c128], %102 {strides = array<i32>} : memref<10x288xf32, #tpu.memory_space<vmem>>, vector<10x32xf32>,
    %104 = vector.extract_strided_slice %6 {offsets = [50, 0], sizes = [10, 128], strides = [1, 1]} : vector<90x128xf32> to vector<10x128xf32>
    %cst_25 = arith.constant dense<0.000000e+00> : vector<10x128xf32>
    %105 = tpu.matmul %102, %2, %cst_25 {dimension_numbers = #tpu.dot_dimension_numbers<[1], [0], [0], [1], [0, 0, 1, 1], [], []>} : vector<10x32xf32>, vector<32x128xf32>, vector<10x128xf32> -> vector<10x128xf32>
    %106 = arith.addf %104, %105 : vector<10x128xf32>
    %107 = arith.negf %106 : vector<10x128xf32>
    %108 = math.exp %107 : vector<10x128xf32>
    %cst_26 = arith.constant 1.000000e+00 : f32
    %109 = vector.broadcast %cst_26 : f32 to vector<10x128xf32>
    %110 = arith.addf %109, %108 : vector<10x128xf32>
    %111 = arith.divf %109, %110 : vector<10x128xf32>
    %112 = math.tanh %106 : vector<10x128xf32>
    %113 = vector.extract_strided_slice %111 {offsets = [0, 32], sizes = [10, 32], strides = [1, 1]} : vector<10x128xf32> to vector<10x32xf32>
    %114 = arith.mulf %113, %99 : vector<10x32xf32>
    %115 = vector.extract_strided_slice %111 {offsets = [0, 0], sizes = [10, 32], strides = [1, 1]} : vector<10x128xf32> to vector<10x32xf32>
    %116 = vector.extract_strided_slice %112 {offsets = [0, 64], sizes = [10, 32], strides = [1, 1]} : vector<10x128xf32> to vector<10x32xf32>
    %117 = arith.mulf %115, %116 : vector<10x32xf32>
    %118 = arith.addf %114, %117 : vector<10x32xf32>
    %119 = vector.extract_strided_slice %111 {offsets = [0, 96], sizes = [10, 32], strides = [1, 1]} : vector<10x128xf32> to vector<10x32xf32>
    %120 = math.tanh %118 : vector<10x32xf32>
    %121 = arith.mulf %119, %120 : vector<10x32xf32>
    %c0_27 = arith.constant 0 : index
    %c160 = arith.constant 160 : index
    %122 = vector.load %arg4[%c0_27, %c160] : memref<10x288xf32, #tpu.memory_space<vmem>>, vector<10x32xf32>
    tpu.vector_store %arg4[%c0_27, %c160], %121 {strides = array<i32>} : memref<10x288xf32, #tpu.memory_space<vmem>>, vector<10x32xf32>,
    %123 = vector.extract_strided_slice %6 {offsets = [60, 0], sizes = [10, 128], strides = [1, 1]} : vector<90x128xf32> to vector<10x128xf32>
    %cst_28 = arith.constant dense<0.000000e+00> : vector<10x128xf32>
    %124 = tpu.matmul %121, %2, %cst_28 {dimension_numbers = #tpu.dot_dimension_numbers<[1], [0], [0], [1], [0, 0, 1, 1], [], []>} : vector<10x32xf32>, vector<32x128xf32>, vector<10x128xf32> -> vector<10x128xf32>
    %125 = arith.addf %123, %124 : vector<10x128xf32>
    %126 = arith.negf %125 : vector<10x128xf32>
    %127 = math.exp %126 : vector<10x128xf32>
    %cst_29 = arith.constant 1.000000e+00 : f32
    %128 = vector.broadcast %cst_29 : f32 to vector<10x128xf32>
    %129 = arith.addf %128, %127 : vector<10x128xf32>
    %130 = arith.divf %128, %129 : vector<10x128xf32>
    %131 = math.tanh %125 : vector<10x128xf32>
    %132 = vector.extract_strided_slice %130 {offsets = [0, 32], sizes = [10, 32], strides = [1, 1]} : vector<10x128xf32> to vector<10x32xf32>
    %133 = arith.mulf %132, %118 : vector<10x32xf32>
    %134 = vector.extract_strided_slice %130 {offsets = [0, 0], sizes = [10, 32], strides = [1, 1]} : vector<10x128xf32> to vector<10x32xf32>
    %135 = vector.extract_strided_slice %131 {offsets = [0, 64], sizes = [10, 32], strides = [1, 1]} : vector<10x128xf32> to vector<10x32xf32>
    %136 = arith.mulf %134, %135 : vector<10x32xf32>
    %137 = arith.addf %133, %136 : vector<10x32xf32>
    %138 = vector.extract_strided_slice %130 {offsets = [0, 96], sizes = [10, 32], strides = [1, 1]} : vector<10x128xf32> to vector<10x32xf32>
    %139 = math.tanh %137 : vector<10x32xf32>
    %140 = arith.mulf %138, %139 : vector<10x32xf32>
    %c0_30 = arith.constant 0 : index
    %c192 = arith.constant 192 : index
    %141 = vector.load %arg4[%c0_30, %c192] : memref<10x288xf32, #tpu.memory_space<vmem>>, vector<10x32xf32>
    tpu.vector_store %arg4[%c0_30, %c192], %140 {strides = array<i32>} : memref<10x288xf32, #tpu.memory_space<vmem>>, vector<10x32xf32>,
    %142 = vector.extract_strided_slice %6 {offsets = [70, 0], sizes = [10, 128], strides = [1, 1]} : vector<90x128xf32> to vector<10x128xf32>
    %cst_31 = arith.constant dense<0.000000e+00> : vector<10x128xf32>
    %143 = tpu.matmul %140, %2, %cst_31 {dimension_numbers = #tpu.dot_dimension_numbers<[1], [0], [0], [1], [0, 0, 1, 1], [], []>} : vector<10x32xf32>, vector<32x128xf32>, vector<10x128xf32> -> vector<10x128xf32>
    %144 = arith.addf %142, %143 : vector<10x128xf32>
    %145 = arith.negf %144 : vector<10x128xf32>
    %146 = math.exp %145 : vector<10x128xf32>
    %cst_32 = arith.constant 1.000000e+00 : f32
    %147 = vector.broadcast %cst_32 : f32 to vector<10x128xf32>
    %148 = arith.addf %147, %146 : vector<10x128xf32>
    %149 = arith.divf %147, %148 : vector<10x128xf32>
    %150 = math.tanh %144 : vector<10x128xf32>
    %151 = vector.extract_strided_slice %149 {offsets = [0, 32], sizes = [10, 32], strides = [1, 1]} : vector<10x128xf32> to vector<10x32xf32>
    %152 = arith.mulf %151, %137 : vector<10x32xf32>
    %153 = vector.extract_strided_slice %149 {offsets = [0, 0], sizes = [10, 32], strides = [1, 1]} : vector<10x128xf32> to vector<10x32xf32>
    %154 = vector.extract_strided_slice %150 {offsets = [0, 64], sizes = [10, 32], strides = [1, 1]} : vector<10x128xf32> to vector<10x32xf32>
    %155 = arith.mulf %153, %154 : vector<10x32xf32>
    %156 = arith.addf %152, %155 : vector<10x32xf32>
    %157 = vector.extract_strided_slice %149 {offsets = [0, 96], sizes = [10, 32], strides = [1, 1]} : vector<10x128xf32> to vector<10x32xf32>
    %158 = math.tanh %156 : vector<10x32xf32>
    %159 = arith.mulf %157, %158 : vector<10x32xf32>
    %c0_33 = arith.constant 0 : index
    %c224 = arith.constant 224 : index
    %160 = vector.load %arg4[%c0_33, %c224] : memref<10x288xf32, #tpu.memory_space<vmem>>, vector<10x32xf32>
    tpu.vector_store %arg4[%c0_33, %c224], %159 {strides = array<i32>} : memref<10x288xf32, #tpu.memory_space<vmem>>, vector<10x32xf32>,
    %161 = vector.extract_strided_slice %6 {offsets = [80, 0], sizes = [10, 128], strides = [1, 1]} : vector<90x128xf32> to vector<10x128xf32>
    %cst_34 = arith.constant dense<0.000000e+00> : vector<10x128xf32>
    %162 = tpu.matmul %159, %2, %cst_34 {dimension_numbers = #tpu.dot_dimension_numbers<[1], [0], [0], [1], [0, 0, 1, 1], [], []>} : vector<10x32xf32>, vector<32x128xf32>, vector<10x128xf32> -> vector<10x128xf32>
    %163 = arith.addf %161, %162 : vector<10x128xf32>
    %164 = arith.negf %163 : vector<10x128xf32>
    %165 = math.exp %164 : vector<10x128xf32>
    %cst_35 = arith.constant 1.000000e+00 : f32
    %166 = vector.broadcast %cst_35 : f32 to vector<10x128xf32>
    %167 = arith.addf %166, %165 : vector<10x128xf32>
    %168 = arith.divf %166, %167 : vector<10x128xf32>
    %169 = math.tanh %163 : vector<10x128xf32>
    %170 = vector.extract_strided_slice %168 {offsets = [0, 32], sizes = [10, 32], strides = [1, 1]} : vector<10x128xf32> to vector<10x32xf32>
    %171 = arith.mulf %170, %156 : vector<10x32xf32>
    %172 = vector.extract_strided_slice %168 {offsets = [0, 0], sizes = [10, 32], strides = [1, 1]} : vector<10x128xf32> to vector<10x32xf32>
    %173 = vector.extract_strided_slice %169 {offsets = [0, 64], sizes = [10, 32], strides = [1, 1]} : vector<10x128xf32> to vector<10x32xf32>
    %174 = arith.mulf %172, %173 : vector<10x32xf32>
    %175 = arith.addf %171, %174 : vector<10x32xf32>
    %176 = vector.extract_strided_slice %168 {offsets = [0, 96], sizes = [10, 32], strides = [1, 1]} : vector<10x128xf32> to vector<10x32xf32>
    %177 = math.tanh %175 : vector<10x32xf32>
    %178 = arith.mulf %176, %177 : vector<10x32xf32>
    %c0_36 = arith.constant 0 : index
    %c256 = arith.constant 256 : index
    %179 = vector.load %arg4[%c0_36, %c256] : memref<10x288xf32, #tpu.memory_space<vmem>>, vector<10x32xf32>
    tpu.vector_store %arg4[%c0_36, %c256], %178 {strides = array<i32>} : memref<10x288xf32, #tpu.memory_space<vmem>>, vector<10x32xf32>,
    return
  }
}

</mosaic_0001>

<bundles_post_ra>
// kernel: tpu_custom_call.1
= control target key start
LH: loop header
LB: loop body
LE: loop exit
PB: predicated region body
PF: predicated region fallthrough
CT: control target
= control target key end

     0   :  { %vm45_vm0 = vcmask 261120   ;;  %s2538_s0 = inlined_call_operand.vmem [shape: f32[90,32], index: 0, kind: input, shape index: {}]   ;;  %s2539_s1 = inlined_call_operand.vmem [shape: f32[32,128], index: 1, kind: input, shape index: {}]   ;;  %s2540_s2 = inlined_call_operand.vmem [shape: f32[32,128], index: 2, kind: input, shape index: {}]   ;;  %s2541_s3 = inlined_call_operand.vmem [shape: f32[1,128], index: 3, kind: input, shape index: {}]   ;;  %s2542_s4 = inlined_call_operand.hbm [shape: f32[10,288], index: 4, kind: output, shape index: {}]  }
   0x1   :  { %v30_v0 = vld [vmem:[%s2539_s1] sm:$0xff]  ;;  %v31_v1 = vld [vmem:[%s2539_s1 + $0x8] sm:$0xff]  ;;  %v32_v2 = vld [vmem:[%s2539_s1 + $0x10] sm:$0xff] }
   0x2   :  { %v1857_v3 = vpack.c.bf16 %v31_v1, %v30_v0  ;;  %v33_v4 = vld [vmem:[%s2539_s1 + $0x18] sm:$0xff]  ;;  %v26_v5 = vld [vmem:[%s2538_s0 + $0x40] sm:$0xff]  ;;  %v35_v8 = vld [vmem:[%s2540_s2 + $0x8] sm:$0xff] }
   0x3   :  { %v1861_v6 = vpack.c.bf16 %v33_v4, %v32_v2  ;;  %1752 = vmatprep.mubr.msk.f32.mxu1 %vm45_vm0, %v26_v5  ;;  %v34_v7 = vld [vmem:[%s2540_s2] sm:$0xff] }
   0x4   :  { %1937 = vmatprep.subr.bf16.mxu1 %v1857_v3  ;;  %1858 = vmatprep.subr.bf16.mxu0 %v1857_v3  ;;  %v18_v9 = vld [vmem:[%s2538_s0] sm:$0xff]  ;;  %v2178_v10 = vpack.c.bf16 %v35_v8, %v34_v7 }
   0x5   :  { %1939 = vmatpush3.bf16.msra.mxu1 %v1857_v3  ;;  %1860 = vmatpush3.bf16.msra.mxu0 %v1857_v3 }
   0x6   :  { %1938 = vmatprep.subr.bf16.mxu1 %v1861_v6  ;;  %1862 = vmatprep.subr.bf16.mxu0 %v1861_v6 }
   0x7   :  { %9 = vsyncpa [#allocation3], 0  ;;  %v36_v11 = vld [vmem:[%s2540_s2 + $0x10] sm:$0xff]  ;;  %v37_v12 = vld [vmem:[%s2540_s2 + $0x18] sm:$0xff]  ;;  %1740 = vmatprep.mubr.msk.f32.mxu0 %vm45_vm0, %v18_v9  ;;  %v2121_v18 = vmov 0.0   ;;  %s2122_s17 = smov 64  }
   0x8   :  { %v27_v13 = vld [vmem:[%s2538_s0 + $0x48] sm:$0xff]  ;;  %v28_v15 = vld [vmem:[%s2538_s0 + $0x50] sm:$0xff]  ;;  %v2197_v16 = vpack.c.bf16 %v37_v12, %v36_v11  ;;  %v29_v17 = vld [vmem:[%s2538_s0 + $0x58] sm:$0x3]  ;;  %s2123_s18 = smov 32   ;;  %vm427_vm1 = vcmask 1041408  }
   0x9   :  { %1940 = vmatpush3.bf16.msra.mxu1 %v1861_v6  ;;  %1864 = vmatpush3.bf16.msra.mxu0 %v1861_v6  ;;  %v19_v14 = vld [vmem:[%s2538_s0 + $0x8] sm:$0xff]  ;;  %v2228_v24 = vld [vmem:[%s2541_s3] ss:$0 sm:$0xff]  ;;  %v20_v57 = vld [vmem:[%s2538_s0 + $0x10] sm:$0xff]  ;;  %vm344_vm2 = vcmask 254976   ;;  %vm492_vm3 = vcmask 1045504  }
   0xa   :  { %1866 = vmatprep.subr.bf16.mxu1 %v2178_v10  ;;  %1890 = vmatprep.subr.bf16.mxu0 %v2178_v10  ;;  %v21_v58 = vld [vmem:[%s2538_s0 + $0x18] sm:$0xff]  ;;  %vm591_vm4 = vcmask 1043456   ;;  %vm504_vm5 = vcmask 517376   ;;  %vm502_vm6 = vcmask 523520   ;;  %vm667_vm7 = vcmask 779776   ;;  %s2125_s5 = smov [#allocation2]  }
   0xb   :  { %vm825_vm8 = vcmask 1042176   ;;  %vm665_vm9 = vcmask 785920   ;;  %vm823_vm10 = vcmask 1048320   ;;  %s1604_s6 = sshll.u32 %s2125_s5, 4  ;;  %s1605_s6 = int_to_ptr.vmem [resolvable:$true] %s1604_s6 }
   0xc   :  { %1753 = vmatmul.mubr.msk.f32.vlgmr.msra.gmra.mrb[0].mxu1 %vm45_vm0, %v27_v13  ;;  %1741 = vmatmul.mubr.msk.f32.vlgmr.msra.gmra.mrb[0].mxu0 %vm45_vm0, %v19_v14  ;;  %s2097_s7 = scalar_lea.vmem %s1605_s6, 768  ;;  %p2102_p1 = scmp.lt.s32.totalorder %s1605_s6, %s1605_s6 }
   0xd   :  { %1868 = vmatpush3.bf16.msra.mxu1 %v2178_v10  ;;  %1755 = vmatprep.mubr.msk.f32.mxu1 %vm45_vm0, %v28_v15  ;;  %p2098_p0 = scmp.ne.s32.totalorder %s1605_s6, %s2097_s7  ;;  %p2103_p2 = scmp.lt.s32.totalorder %s2097_s7, %s2097_s7 }
   0xe   :  { %1870 = vmatprep.subr.bf16.mxu1 %v2197_v16  ;;  %1892 = vmatpush3.bf16.msra.mxu0 %v2178_v10 }
   0xf   :  { %1894 = vmatprep.subr.bf16.mxu0 %v2197_v16  ;;  %1743 = vmatprep.mubr.msk.f32.mxu0 %vm45_vm0, %v20_v57  ;;  %p2104_p3 = por %p2103_p2, %p2102_p1 }
  0x10   :  { %1756 = vmatmul.mubr.msk.f32.gmra.mrb[2].mxu1 %vm45_vm0, %v29_v17  ;;  %1744 = vmatmul.mubr.msk.f32.gmra.mrb[2].mxu0 %vm45_vm0, %v21_v58 }
  0x11   :  { %1872 = vmatpush3.bf16.msra.mxu1 %v2197_v16  ;;  %1766 = vmatprep.mubr.f32.mxu1 %v2121_v18  ;;  %p2105_p4 = pnand %p2104_p3, %p2098_p0 }
  0x12   :  { %1874 = vmatprep.subr.bf16.mxu1 %v2178_v10  ;;  %1896 = vmatpush3.bf16.msra.mxu0 %v2197_v16 }
  0x13   :  { %1906 = vmatprep.subr.bf16.mxu0 %v2178_v10 }
  0x14   :  { %1767 = vmatmul.mubr.f32.vlgmr.msra.gmra.mrb[4].mxu1 %v2121_v18 }
  0x15   :  { %1876 = vmatpush3.bf16.msra.mxu1 %v2178_v10 }
  0x16   :  { %1878 = vmatprep.subr.bf16.mxu1 %v2197_v16 }
  0x19   :  { %1880 = vmatpush3.bf16.msra.mxu1 %v2197_v16 }
  0x1a   :  { %1882 = vmatprep.subr.bf16.mxu1 %v2178_v10 }
  0xdf   :  { %v2219_v19 = vpop.f32.mrb[0].mxu1  ;;  %v1742_v20 = vpop.f32.mrb[0].mxu0 }
  0xe0   :  { %v2221_v21 = vpop.f32.mrb[1].mxu1  ;;  %v148_v22 = vpop.f32.mrb[1].mxu0  ;;  %v2234_v27 = vadd.f32 %v1742_v20, %v2228_v24 }
  0xe1   :  { %v149_v26 = vadd.f32 %v2228_v24, %v148_v22 }
  0xe3   :  { %v2223_v23 = vpop.f32.mrb[2].mxu1  ;;  %v2268_v1 = vpop.f32.mrb[2].mxu0 }
  0xe4   :  { %v2230_v25 = vpop.f32.mrb[3].mxu1  ;;  %v158_v2 = vpop.f32.mrb[3].mxu0 }
  0xe5   :  { %v2271_v6 = vadd.f32 %v2228_v24, %v158_v2 }
  0xe7   :  { %v1768_v28 = vpop.f32.mrb[4].mxu1 }
  0xe8   :  { %v276_v29 = vpop.f32.mrb[5].mxu1  ;;  %v286_v31 = vadd.f32 %v1768_v28, %v2234_v27 }
  0xe9   :  { %v285_v30 = vadd.f32 %v276_v29, %v149_v26 }
  0xea   :  { %v1629_v35 = vmul.f32 -1.442695, %v286_v31 }
  0xeb   :  { %1952 = vtanh.f32 %v285_v30  ;;  %v1628_v34 = vmul.f32 -1.442695, %v285_v30 }
  0xec   :  { %1954 = vtanh.f32 %v286_v31 }
  0xed   :  { %1956 = vpow2.f32 %v1628_v34 }
  0xee   :  { %1958 = vpow2.f32 %v1629_v35 }
  0xf5   :  { %v1953_v32 = vpop.eup %1952 }
  0xf6   :  { %305 = vrot.lane.b32.xlu0 %v1953_v32, %s2122_s17  ;;  %v1955_v33 = vpop.eup %1954 }
  0xf7   :  { %v1957_v36 = vpop.eup %1956 }
  0xf8   :  { %v293_v37 = vadd.f32 1.0, %v1957_v36  ;;  %v1959_v38 = vpop.eup %1958 }
  0xf9   :  { %v294_v39 = vadd.f32 1.0, %v1959_v38 }
  0xfa   :  { %307 = vrot.lane.b32.xlu0 %v1955_v33, %s2122_s17  ;;  %1960 = vrcp.f32 %v293_v37 }
  0xfb   :  { %1962 = vrcp.f32 %v294_v39 }
 0x104   :  { %v1961_v40 = vpop.eup %1960 }
 0x105   :  { %v1963_v43 = vpop.eup %1962  ;;  %v301_v46 = vmul.f32 0.0, %v1961_v40 }
 0x106   :  { %v302_v49 = vmul.f32 0.0, %v1963_v43 }
 0x168   :  { %v306_v41 = vpop.permute.xlu0 %305 }
 0x169   :  { %v311_v42 = vmul.f32 %v1961_v40, %v306_v41 }
 0x16b   :  { %315 = vrot.lane.b32.xlu1 %v311_v42, %s2123_s18 }
 0x16c   :  { %v308_v44 = vpop.permute.xlu0 %307 }
 0x16d   :  { %v312_v45 = vmul.f32 %v1963_v43, %v308_v44 }
 0x16f   :  { %317 = vrot.lane.b32.xlu1 %v312_v45, %s2123_s18 }
 0x1dd   :  { %v316_v47 = vpop.permute.xlu1 %315 }
 0x1de   :  { %v2241_v48 = vadd.f32 %v316_v47, %v301_v46 }
 0x1e0   :  { %1964 = vtanh.f32 %v2241_v48  ;;  %v451_v52 = vrot.slane %v2241_v48, 6 }
 0x1e1   :  { %v318_v50 = vpop.permute.xlu1 %317 }
 0x1e2   :  { %v322_v51 = vadd.f32 %v318_v50, %v302_v49 }
 0x1e4   :  { %1966 = vtanh.f32 %v322_v51  ;;  %v452_v53 = vrot.slane %v322_v51, 6 }
 0x1e6   :  { %v453_v54 = vsel %vm427_vm1, %v451_v52, %v452_v53 }
 0x1ea   :  { %v1965_v55 = vpop.eup %1964 }
 0x1eb   :  { %327 = vrot.lane.b32.xlu0 %v1965_v55, %s2122_s17 }
 0x1ee   :  { %v1967_v56 = vpop.eup %1966 }
 0x1ef   :  { %329 = vrot.lane.b32.xlu1 %v1967_v56, %s2122_s17  ;;  %v2307_v56 = vadd.f32 %v2268_v1, %v2228_v24 }
 0x25d   :  { %v328_v59 = vpop.permute.xlu0 %327 }
 0x25e   :  { %v333_v60 = vmul.f32 %v1961_v40, %v328_v59 }
 0x260   :  { %337 = vrot.lane.b32.xlu0 %v333_v60, %s2123_s18 }
 0x261   :  { %v330_v61 = vpop.permute.xlu1 %329 }
 0x262   :  { %v334_v62 = vmul.f32 %v1963_v43, %v330_v61 }
 0x264   :  { %339 = vrot.lane.b32.xlu1 %v334_v62, %s2123_s18 }
 0x2d2   :  { %v338_v63 = vpop.permute.xlu0 %337 }
 0x2d3   :  { %343 = vst.msk [vmem:[#allocation2] sm:$0xff] %vm45_vm0, %v338_v63  ;;  %1777 = vmatprep.mubr.msk.f32.mxu1 %vm45_vm0, %v338_v63 }
 0x2d6   :  { %v340_v0 = vpop.permute.xlu1 %339 }
 0x2d7   :  { %345 = vst.msk [vmem:[#allocation2 + $0x18] sm:$0x3] %vm344_vm2, %v340_v0  ;;  %1778 = vmatmul.mubr.msk.f32.vlgmr.msra.gmra.mrb[6].mxu1 %vm45_vm0, %v340_v0 }
 0x2d8   :  { %1884 = vmatpush3.bf16.msra.mxu1 %v2178_v10 }
 0x2d9   :  { %1886 = vmatprep.subr.bf16.mxu1 %v2197_v16 }
 0x2dc   :  { %1888 = vmatpush3.bf16.msra.mxu1 %v2197_v16 }
 0x2dd   :  { %1898 = vmatprep.subr.bf16.mxu1 %v2178_v10 }
 0x3aa   :  { %v1779_v3 = vpop.f32.mrb[6].mxu1 }
 0x3ab   :  { %v429_v4 = vrot.slane %v1779_v3, 6  ;;  %v416_v5 = vpop.f32.mrb[7].mxu1 }
 0x3ac   :  { %v428_v7 = vrot.slane %v416_v5, 6 }
 0x3ae   :  { %v433_v8 = vadd.f32 %v428_v7, %v2234_v27  ;;  %v430_v9 = vsel %vm427_vm1, %v428_v7, %v429_v4 }
 0x3af   :  { %v434_v11 = vadd.f32 %v430_v9, %v2271_v6 }
 0x3b0   :  { %1968 = vtanh.f32 %v433_v8  ;;  %v1632_v14 = vmul.f32 -1.442695, %v433_v8 }
 0x3b1   :  { %1970 = vtanh.f32 %v434_v11  ;;  %v1633_v15 = vmul.f32 -1.442695, %v434_v11 }
 0x3b2   :  { %1972 = vpow2.f32 %v1632_v14 }
 0x3b3   :  { %1974 = vpow2.f32 %v1633_v15 }
 0x3ba   :  { %v1969_v12 = vpop.eup %1968 }
 0x3bb   :  { %v1971_v13 = vpop.eup %1970  ;;  %460 = vrot.lane.b32.xlu0 %v1969_v12, %s2122_s17 }
 0x3bc   :  { %462 = vrot.lane.b32.xlu1 %v1971_v13, %s2122_s17  ;;  %v1973_v17 = vpop.eup %1972 }
 0x3bd   :  { %v1975_v18 = vpop.eup %1974  ;;  %v441_v20 = vadd.f32 1.0, %v1973_v17 }
 0x3be   :  { %v442_v22 = vadd.f32 1.0, %v1975_v18 }
 0x3bf   :  { %1976 = vrcp.f32 %v441_v20 }
 0x3c0   :  { %1978 = vrcp.f32 %v442_v22 }
 0x3c9   :  { %v1977_v26 = vpop.eup %1976 }
 0x3ca   :  { %v1979_v28 = vpop.eup %1978  ;;  %v456_v32 = vmul.f32 %v1977_v26, %v451_v52 }
 0x3cb   :  { %v457_v34 = vmul.f32 %v1979_v28, %v453_v54 }
 0x42d   :  { %v461_v27 = vpop.permute.xlu0 %460 }
 0x42e   :  { %v466_v29 = vmul.f32 %v1977_v26, %v461_v27  ;;  %v463_v30 = vpop.permute.xlu1 %462  ;;  %v23_v27 = vld [vmem:[%s2538_s0 + $0x28] sm:$0xff] }
 0x42f   :  { %v467_v31 = vmul.f32 %v1979_v28, %v463_v30 }
 0x430   :  { %470 = vrot.lane.b32.xlu0 %v466_v29, %s2123_s18  ;;  %v25_v29 = vld [vmem:[%s2538_s0 + $0x38] sm:$0xff] }
 0x431   :  { %472 = vrot.lane.b32.xlu1 %v467_v31, %s2123_s18 }
 0x4a2   :  { %v471_v33 = vpop.permute.xlu0 %470 }
 0x4a3   :  { %v2282_v35 = vadd.f32 %v471_v33, %v456_v32  ;;  %v473_v36 = vpop.permute.xlu1 %472 }
 0x4a4   :  { %v477_v37 = vadd.f32 %v473_v36, %v457_v34 }
 0x4a5   :  { %1980 = vtanh.f32 %v2282_v35  ;;  %v615_v38 = vrot.slane %v2282_v35, 6 }
 0x4a6   :  { %1982 = vtanh.f32 %v477_v37  ;;  %v616_v39 = vrot.slane %v477_v37, 6 }
 0x4a8   :  { %v617_v40 = vsel %vm427_vm1, %v615_v38, %v616_v39 }
 0x4af   :  { %v1981_v41 = vpop.eup %1980 }
 0x4b0   :  { %v1983_v42 = vpop.eup %1982  ;;  %482 = vrot.lane.b32.xlu0 %v1981_v41, %s2122_s17 }
 0x4b1   :  { %484 = vrot.lane.b32.xlu1 %v1983_v42, %s2122_s17 }
 0x522   :  { %v483_v43 = vpop.permute.xlu0 %482 }
 0x523   :  { %v488_v44 = vmul.f32 %v1977_v26, %v483_v43  ;;  %v485_v45 = vpop.permute.xlu1 %484  ;;  %v22_v26 = vld [vmem:[%s2538_s0 + $0x20] sm:$0xff] }
 0x524   :  { %v489_v46 = vmul.f32 %v1979_v28, %v485_v45  ;;  %v24_v28 = vld [vmem:[%s2538_s0 + $0x30] sm:$0xff]  ;;  %1746 = vmatprep.mubr.msk.f32.mxu0 %vm45_vm0, %v22_v26 }
 0x525   :  { %v493_v47 = vrot.slane %v488_v44, 2  ;;  %1747 = vmatmul.mubr.msk.f32.gmra.mrb[4].mxu0 %vm45_vm0, %v23_v27 }
 0x526   :  { %v2289_v48 = vrot.slane %v489_v46, 2  ;;  %1749 = vmatprep.mubr.msk.f32.mxu0 %vm45_vm0, %v24_v28 }
 0x528   :  { %508 = vrot.lane.b32.xlu1 %v2289_v48, %s2123_s18  ;;  %v2295_v49 = vsel %vm492_vm3, %v493_v47, %v2289_v48 }
 0x529   :  { %506 = vrot.lane.b32.xlu0 %v2295_v49, %s2123_s18  ;;  %1750 = vmatmul.mubr.msk.f32.gmra.mrb[6].mxu0 %vm45_vm0, %v25_v29 }
 0x59a   :  { %v509_v51 = vpop.permute.xlu1 %508 }
 0x59b   :  { %v507_v50 = vpop.permute.xlu0 %506 }
 0x59c   :  { %1788 = vmatprep.mubr.msk.f32.mxu1 %vm45_vm0, %v507_v50 }
 0x59d   :  { %1789 = vmatmul.mubr.msk.f32.vlgmr.msra.gmra.mrb[8].mxu1 %vm45_vm0, %v509_v51 }
 0x59e   :  { %1900 = vmatpush3.bf16.msra.mxu1 %v2178_v10 }
 0x59f   :  { %1902 = vmatprep.subr.bf16.mxu1 %v2197_v16 }
 0x5a2   :  { %1904 = vmatpush3.bf16.msra.mxu1 %v2197_v16 }
 0x5a3   :  { %1914 = vmatprep.subr.bf16.mxu1 %v2178_v10 }
 0x5f8   :  { %v2353_v39 = vpop.f32.mrb[4].mxu0 }
 0x670   :  { %v1790_v52 = vpop.f32.mrb[8].mxu1 }
 0x671   :  { %v593_v53 = vrot.slane %v1790_v52, 4  ;;  %v580_v54 = vpop.f32.mrb[9].mxu1 }
 0x672   :  { %v592_v55 = vrot.slane %v580_v54, 4 }
 0x674   :  { %v594_v57 = vsel %vm591_vm4, %v592_v55, %v593_v53  ;;  %v597_v58 = vadd.f32 %v592_v55, %v2271_v6 }
 0x675   :  { %v598_v59 = vadd.f32 %v594_v57, %v2307_v56 }
 0x676   :  { %1984 = vtanh.f32 %v597_v58  ;;  %v1636_v62 = vmul.f32 -1.442695, %v597_v58 }
 0x677   :  { %1986 = vtanh.f32 %v598_v59  ;;  %v1637_v63 = vmul.f32 -1.442695, %v598_v59 }
 0x678   :  { %1988 = vpow2.f32 %v1636_v62 }
 0x679   :  { %1990 = vpow2.f32 %v1637_v63 }
 0x680   :  { %v1985_v60 = vpop.eup %1984 }
 0x681   :  { %v1987_v61 = vpop.eup %1986  ;;  %624 = vrot.lane.b32.xlu0 %v1985_v60, %s2122_s17 }
 0x682   :  { %626 = vrot.lane.b32.xlu1 %v1987_v61, %s2122_s17  ;;  %v1989_v0 = vpop.eup %1988 }
 0x683   :  { %v1991_v1 = vpop.eup %1990  ;;  %v605_v2 = vadd.f32 1.0, %v1989_v0 }
 0x684   :  { %v606_v3 = vadd.f32 1.0, %v1991_v1 }
 0x685   :  { %1992 = vrcp.f32 %v605_v2 }
 0x686   :  { %1994 = vrcp.f32 %v606_v3 }
 0x68f   :  { %v1993_v4 = vpop.eup %1992 }
 0x690   :  { %v1995_v6 = vpop.eup %1994  ;;  %v620_v11 = vmul.f32 %v1993_v4, %v615_v38 }
 0x691   :  { %v621_v13 = vmul.f32 %v1995_v6, %v617_v40  ;;  %v168_v40 = vpop.f32.mrb[5].mxu0 }
 0x692   :  { %v2355_v41 = vpop.f32.mrb[6].mxu0  ;;  %v169_v51 = vadd.f32 %v2228_v24, %v168_v40 }
 0x693   :  { %v2357_v42 = vpop.f32.mrb[7].mxu0 }
 0x6f3   :  { %v625_v5 = vpop.permute.xlu0 %624 }
 0x6f4   :  { %v630_v7 = vmul.f32 %v1993_v4, %v625_v5  ;;  %v627_v8 = vpop.permute.xlu1 %626 }
 0x6f5   :  { %v631_v9 = vmul.f32 %v1995_v6, %v627_v8 }
 0x6f6   :  { %634 = vrot.lane.b32.xlu0 %v630_v7, %s2123_s18 }
 0x6f7   :  { %636 = vrot.lane.b32.xlu1 %v631_v9, %s2123_s18 }
 0x768   :  { %v635_v12 = vpop.permute.xlu0 %634 }
 0x769   :  { %v2316_v14 = vadd.f32 %v635_v12, %v620_v11  ;;  %v637_v15 = vpop.permute.xlu1 %636 }
 0x76a   :  { %v641_v17 = vadd.f32 %v637_v15, %v621_v13 }
 0x76b   :  { %1996 = vtanh.f32 %v2316_v14  ;;  %v777_v18 = vrot.slane %v2316_v14, 6 }
 0x76c   :  { %1998 = vtanh.f32 %v641_v17  ;;  %v778_v20 = vrot.slane %v641_v17, 6 }
 0x76e   :  { %v2323_v22 = vsel %vm427_vm1, %v777_v18, %v778_v20 }
 0x775   :  { %v1997_v30 = vpop.eup %1996 }
 0x776   :  { %v1999_v31 = vpop.eup %1998  ;;  %646 = vrot.lane.b32.xlu0 %v1997_v30, %s2122_s17 }
 0x777   :  { %648 = vrot.lane.b32.xlu1 %v1999_v31, %s2122_s17 }
 0x7e8   :  { %v647_v32 = vpop.permute.xlu0 %646 }
 0x7e9   :  { %v652_v33 = vmul.f32 %v1993_v4, %v647_v32  ;;  %v649_v34 = vpop.permute.xlu1 %648  ;;  %v2395_v32 = vadd.f32 %v2228_v24, %v2357_v42 }
 0x7ea   :  { %v653_v35 = vmul.f32 %v1995_v6, %v649_v34 }
 0x7eb   :  { %v656_v36 = vrot.slane %v652_v33, 4  ;;  %v174_v33 = vadd.f32 %v2353_v39, %v2228_v24 }
 0x7ec   :  { %v2343_v37 = vrot.slane %v653_v35, 4 }
 0x7ee   :  { %671 = vrot.lane.b32.xlu1 %v2343_v37, %s2123_s18  ;;  %v2349_v38 = vsel %vm591_vm4, %v656_v36, %v2343_v37 }
 0x7ef   :  { %669 = vrot.lane.b32.xlu0 %v2349_v38, %s2123_s18 }
 0x860   :  { %v672_v44 = vpop.permute.xlu1 %671 }
 0x861   :  { %v670_v43 = vpop.permute.xlu0 %669 }
 0x862   :  { %1799 = vmatprep.mubr.msk.f32.mxu0 %vm45_vm0, %v670_v43 }
 0x863   :  { %1800 = vmatmul.mubr.msk.f32.vlgmr.msra.gmra.mrb[8].mxu0 %vm45_vm0, %v672_v44 }
 0x864   :  { %1908 = vmatpush3.bf16.msra.mxu0 %v2178_v10 }
 0x865   :  { %1910 = vmatprep.subr.bf16.mxu0 %v2197_v16 }
 0x868   :  { %1912 = vmatpush3.bf16.msra.mxu0 %v2197_v16 }
 0x869   :  { %1922 = vmatprep.subr.bf16.mxu0 %v2178_v10 }
 0x936   :  { %v1801_v45 = vpop.f32.mrb[8].mxu0 }
 0x937   :  { %v755_v46 = vrot.slane %v1801_v45, 2  ;;  %v743_v47 = vpop.f32.mrb[9].mxu0 }
 0x938   :  { %v754_v50 = vrot.slane %v743_v47, 2 }
 0x93a   :  { %v756_v52 = vsel %vm492_vm3, %v754_v50, %v755_v46  ;;  %v759_v53 = vadd.f32 %v754_v50, %v2307_v56 }
 0x93b   :  { %v760_v54 = vadd.f32 %v756_v52, %v169_v51 }
 0x93c   :  { %2000 = vtanh.f32 %v759_v53  ;;  %v1640_v58 = vmul.f32 -1.442695, %v759_v53 }
 0x93d   :  { %2002 = vtanh.f32 %v760_v54  ;;  %v1641_v59 = vmul.f32 -1.442695, %v760_v54 }
 0x93e   :  { %2004 = vpow2.f32 %v1640_v58 }
 0x93f   :  { %2006 = vpow2.f32 %v1641_v59 }
 0x946   :  { %v2001_v55 = vpop.eup %2000 }
 0x947   :  { %v2003_v57 = vpop.eup %2002  ;;  %786 = vrot.lane.b32.xlu0 %v2001_v55, %s2122_s17 }
 0x948   :  { %788 = vrot.lane.b32.xlu1 %v2003_v57, %s2122_s17  ;;  %v2005_v60 = vpop.eup %2004 }
 0x949   :  { %v2007_v61 = vpop.eup %2006  ;;  %v767_v62 = vadd.f32 1.0, %v2005_v60 }
 0x94a   :  { %v768_v63 = vadd.f32 1.0, %v2007_v61 }
 0x94b   :  { %2008 = vrcp.f32 %v767_v62 }
 0x94c   :  { %2010 = vrcp.f32 %v768_v63 }
 0x955   :  { %v2009_v56 = vpop.eup %2008 }
 0x956   :  { %v2011_v1 = vpop.eup %2010  ;;  %v782_v5 = vmul.f32 %v2009_v56, %v777_v18 }
 0x957   :  { %v783_v7 = vmul.f32 %v2011_v1, %v2323_v22 }
 0x9b9   :  { %v787_v0 = vpop.permute.xlu0 %786 }
 0x9ba   :  { %v792_v2 = vmul.f32 %v2009_v56, %v787_v0  ;;  %v789_v3 = vpop.permute.xlu1 %788 }
 0x9bb   :  { %v793_v4 = vmul.f32 %v2011_v1, %v789_v3 }
 0x9bc   :  { %796 = vrot.lane.b32.xlu0 %v792_v2, %s2123_s18 }
 0x9bd   :  { %798 = vrot.lane.b32.xlu1 %v793_v4, %s2123_s18 }
 0xa2e   :  { %v797_v6 = vpop.permute.xlu0 %796 }
 0xa2f   :  { %v802_v8 = vadd.f32 %v797_v6, %v782_v5  ;;  %v799_v9 = vpop.permute.xlu1 %798 }
 0xa30   :  { %v803_v11 = vadd.f32 %v799_v9, %v783_v7 }
 0xa31   :  { %2012 = vtanh.f32 %v802_v8  ;;  %v928_v12 = vrot.slane %v802_v8, 6 }
 0xa32   :  { %2014 = vtanh.f32 %v803_v11  ;;  %v929_v13 = vrot.slane %v803_v11, 6 }
 0xa34   :  { %v930_v15 = vsel %vm427_vm1, %v928_v12, %v929_v13 }
 0xa3b   :  { %v2013_v17 = vpop.eup %2012 }
 0xa3c   :  { %v2015_v20 = vpop.eup %2014  ;;  %808 = vrot.lane.b32.xlu0 %v2013_v17, %s2122_s17  ;;  %v2419_v17 = vadd.f32 %v2355_v41, %v2228_v24 }
 0xa3d   :  { %810 = vrot.lane.b32.xlu1 %v2015_v20, %s2122_s17 }
 0xaae   :  { %v809_v14 = vpop.permute.xlu0 %808 }
 0xaaf   :  { %v814_v18 = vmul.f32 %v2009_v56, %v809_v14  ;;  %v811_v26 = vpop.permute.xlu1 %810 }
 0xab0   :  { %v815_v27 = vmul.f32 %v2011_v1, %v811_v26 }
 0xab1   :  { %v818_v22 = vrot.slane %v814_v18, 6 }
 0xab2   :  { %v2378_v28 = vrot.slane %v815_v27, 6 }
 0xab4   :  { %829 = vrot.lane.b32.xlu1 %v2378_v28, %s2123_s18  ;;  %v2384_v29 = vsel %vm427_vm1, %v818_v22, %v2378_v28 }
 0xab5   :  { %827 = vrot.lane.b32.xlu0 %v2384_v29, %s2123_s18 }
 0xb26   :  { %v830_v31 = vpop.permute.xlu1 %829 }
 0xb27   :  { %v828_v30 = vpop.permute.xlu0 %827 }
 0xb28   :  { %1810 = vmatprep.mubr.msk.f32.mxu1 %vm45_vm0, %v828_v30 }
 0xb29   :  { %1811 = vmatmul.mubr.msk.f32.vlgmr.msra.gmra.mrb[10].mxu1 %vm45_vm0, %v830_v31 }
 0xb2a   :  { %1916 = vmatpush3.bf16.msra.mxu1 %v2178_v10 }
 0xb2b   :  { %1918 = vmatprep.subr.bf16.mxu1 %v2197_v16 }
 0xb2e   :  { %1920 = vmatpush3.bf16.msra.mxu1 %v2197_v16 }
 0xbfc   :  { %v1812_v34 = vpop.f32.mrb[10].mxu1 }
 0xbfd   :  { %v911_v35 = vadd.f32 %v1812_v34, %v2395_v32  ;;  %v901_v36 = vpop.f32.mrb[11].mxu1 }
 0xbfe   :  { %v910_v40 = vadd.f32 %v901_v36, %v174_v33 }
 0xbff   :  { %2016 = vtanh.f32 %v911_v35  ;;  %v1645_v45 = vmul.f32 -1.442695, %v911_v35 }
 0xc00   :  { %2018 = vtanh.f32 %v910_v40  ;;  %v1644_v46 = vmul.f32 -1.442695, %v910_v40 }
 0xc01   :  { %2020 = vpow2.f32 %v1645_v45 }
 0xc02   :  { %2022 = vpow2.f32 %v1644_v46 }
 0xc09   :  { %v2017_v43 = vpop.eup %2016 }
 0xc0a   :  { %v2019_v44 = vpop.eup %2018  ;;  %939 = vrot.lane.b32.xlu1 %v2017_v43, %s2122_s17 }
 0xc0b   :  { %937 = vrot.lane.b32.xlu0 %v2019_v44, %s2122_s17  ;;  %v2021_v42 = vpop.eup %2020 }
 0xc0c   :  { %v2023_v47 = vpop.eup %2022  ;;  %v919_v39 = vadd.f32 1.0, %v2021_v42 }
 0xc0d   :  { %v918_v50 = vadd.f32 1.0, %v2023_v47 }
 0xc0e   :  { %2024 = vrcp.f32 %v919_v39 }
 0xc0f   :  { %2026 = vrcp.f32 %v918_v50 }
 0xc18   :  { %v2025_v51 = vpop.eup %2024 }
 0xc19   :  { %v2027_v53 = vpop.eup %2026  ;;  %v934_v58 = vmul.f32 %v2025_v51, %v929_v13 }
 0xc1a   :  { %v933_v60 = vmul.f32 %v2027_v53, %v930_v15 }
 0xc7c   :  { %v940_v52 = vpop.permute.xlu1 %939 }
 0xc7d   :  { %v944_v54 = vmul.f32 %v2025_v51, %v940_v52  ;;  %v938_v55 = vpop.permute.xlu0 %937 }
 0xc7e   :  { %v943_v57 = vmul.f32 %v2027_v53, %v938_v55 }
 0xc7f   :  { %949 = vrot.lane.b32.xlu1 %v944_v54, %s2123_s18 }
 0xc80   :  { %947 = vrot.lane.b32.xlu0 %v943_v57, %s2123_s18 }
 0xcf1   :  { %v950_v59 = vpop.permute.xlu1 %949 }
 0xcf2   :  { %v954_v61 = vadd.f32 %v950_v59, %v934_v58  ;;  %v948_v62 = vpop.permute.xlu0 %947 }
 0xcf3   :  { %v953_v63 = vadd.f32 %v948_v62, %v933_v60 }
 0xcf4   :  { %2028 = vtanh.f32 %v954_v61  ;;  %v1082_v56 = vrot.slane %v954_v61, 6 }
 0xcf5   :  { %2030 = vtanh.f32 %v953_v63  ;;  %v1081_v0 = vrot.slane %v953_v63, 6 }
 0xcf7   :  { %v1083_v1 = vsel %vm427_vm1, %v1081_v0, %v1082_v56 }
 0xcfe   :  { %v2029_v2 = vpop.eup %2028 }
 0xcff   :  { %v2031_v3 = vpop.eup %2030  ;;  %961 = vrot.lane.b32.xlu1 %v2029_v2, %s2122_s17 }
 0xd00   :  { %959 = vrot.lane.b32.xlu0 %v2031_v3, %s2122_s17 }
 0xd71   :  { %v962_v4 = vpop.permute.xlu1 %961 }
 0xd72   :  { %v966_v5 = vmul.f32 %v2025_v51, %v962_v4  ;;  %v960_v6 = vpop.permute.xlu0 %959 }
 0xd73   :  { %v965_v7 = vmul.f32 %v2027_v53, %v960_v6 }
 0xd74   :  { %971 = vrot.lane.b32.xlu1 %v966_v5, %s2123_s18  ;;  %v2445_v5 = vadd.f32 %v2228_v24, %v2221_v21 }
 0xd75   :  { %969 = vrot.lane.b32.xlu0 %v965_v7, %s2123_s18 }
 0xde6   :  { %v972_v8 = vpop.permute.xlu1 %971 }
 0xde7   :  { %976 = vst.msk [vmem:[#allocation2 + $0x20] sm:$0x3] %vm344_vm2, %v972_v8  ;;  %v970_v9 = vpop.permute.xlu0 %969 }
 0xde8   :  { %975 = vst.msk [vmem:[#allocation2 + $0x8] sm:$0xff] %vm45_vm0, %v970_v9  ;;  %1821 = vmatprep.mubr.msk.f32.mxu0 %vm45_vm0, %v970_v9 }
 0xde9   :  { %1822 = vmatmul.mubr.msk.f32.vlgmr.msra.gmra.mrb[10].mxu0 %vm45_vm0, %v972_v8 }
 0xdea   :  { %1924 = vmatpush3.bf16.msra.mxu0 %v2178_v10 }
 0xdeb   :  { %1926 = vmatprep.subr.bf16.mxu0 %v2197_v16 }
 0xdee   :  { %1928 = vmatpush3.bf16.msra.mxu0 %v2197_v16 }
 0xdef   :  { %1930 = vmatprep.subr.bf16.mxu0 %v2178_v10 }
 0xebc   :  { %v1823_v11 = vpop.f32.mrb[10].mxu0 }
 0xebd   :  { %v1059_v12 = vrot.slane %v1823_v11, 6  ;;  %v1047_v13 = vpop.f32.mrb[11].mxu0 }
 0xebe   :  { %v1058_v15 = vrot.slane %v1047_v13, 6 }
 0xec0   :  { %v1060_v20 = vsel %vm427_vm1, %v1058_v15, %v1059_v12  ;;  %v1063_v14 = vadd.f32 %v1058_v15, %v2395_v32 }
 0xec1   :  { %v1064_v18 = vadd.f32 %v1060_v20, %v2419_v17 }
 0xec2   :  { %2032 = vtanh.f32 %v1063_v14  ;;  %v1648_v22 = vmul.f32 -1.442695, %v1063_v14 }
 0xec3   :  { %2034 = vtanh.f32 %v1064_v18  ;;  %v1649_v30 = vmul.f32 -1.442695, %v1064_v18 }
 0xec4   :  { %2036 = vpow2.f32 %v1648_v22 }
 0xec5   :  { %2038 = vpow2.f32 %v1649_v30 }
 0xecc   :  { %v2033_v26 = vpop.eup %2032 }
 0xecd   :  { %v2035_v27 = vpop.eup %2034  ;;  %1090 = vrot.lane.b32.xlu0 %v2033_v26, %s2122_s17 }
 0xece   :  { %1092 = vrot.lane.b32.xlu1 %v2035_v27, %s2122_s17  ;;  %v2037_v41 = vpop.eup %2036 }
 0xecf   :  { %v2039_v31 = vpop.eup %2038  ;;  %v1071_v33 = vadd.f32 1.0, %v2037_v41 }
 0xed0   :  { %v1072_v34 = vadd.f32 1.0, %v2039_v31 }
 0xed1   :  { %2040 = vrcp.f32 %v1071_v33 }
 0xed2   :  { %2042 = vrcp.f32 %v1072_v34 }
 0xedb   :  { %v2041_v32 = vpop.eup %2040 }
 0xedc   :  { %v2043_v36 = vpop.eup %2042  ;;  %v1086_v45 = vmul.f32 %v2041_v32, %v1081_v0 }
 0xedd   :  { %v1087_v42 = vmul.f32 %v2043_v36, %v1083_v1 }
 0xf3f   :  { %v1091_v35 = vpop.permute.xlu0 %1090 }
 0xf40   :  { %v1096_v40 = vmul.f32 %v2041_v32, %v1091_v35  ;;  %v1093_v43 = vpop.permute.xlu1 %1092 }
 0xf41   :  { %v1097_v44 = vmul.f32 %v2043_v36, %v1093_v43 }
 0xf42   :  { %1100 = vrot.lane.b32.xlu0 %v1096_v40, %s2123_s18 }
 0xf43   :  { %1102 = vrot.lane.b32.xlu1 %v1097_v44, %s2123_s18 }
 0xfb4   :  { %v1101_v46 = vpop.permute.xlu0 %1100 }
 0xfb5   :  { %v1106_v47 = vadd.f32 %v1101_v46, %v1086_v45  ;;  %v1103_v39 = vpop.permute.xlu1 %1102 }
 0xfb6   :  { %v1107_v50 = vadd.f32 %v1103_v39, %v1087_v42 }
 0xfb7   :  { %2044 = vtanh.f32 %v1106_v47  ;;  %v1241_v51 = vrot.slane %v1106_v47, 6 }
 0xfb8   :  { %2046 = vtanh.f32 %v1107_v50  ;;  %v1242_v52 = vrot.slane %v1107_v50, 6 }
 0xfba   :  { %v1243_v53 = vsel %vm427_vm1, %v1241_v51, %v1242_v52 }
 0xfc1   :  { %v2045_v54 = vpop.eup %2044 }
 0xfc2   :  { %v2047_v55 = vpop.eup %2046  ;;  %1112 = vrot.lane.b32.xlu0 %v2045_v54, %s2122_s17 }
 0xfc3   :  { %1114 = vrot.lane.b32.xlu1 %v2047_v55, %s2122_s17 }
0x1034   :  { %v1113_v57 = vpop.permute.xlu0 %1112 }
0x1035   :  { %v1118_v58 = vmul.f32 %v2041_v32, %v1113_v57  ;;  %v1115_v59 = vpop.permute.xlu1 %1114 }
0x1036   :  { %v1119_v60 = vmul.f32 %v2043_v36, %v1115_v59 }
0x1037   :  { %v1122_v61 = vrot.slane %v1118_v58, 2 }
0x1038   :  { %v2431_v62 = vrot.slane %v1119_v60, 2  ;;  %v194_v60 = vadd.f32 %v2219_v19, %v2228_v24 }
0x103a   :  { %1135 = vrot.lane.b32.xlu1 %v2431_v62, %s2123_s18  ;;  %v2437_v63 = vsel %vm492_vm3, %v1122_v61, %v2431_v62 }
0x103b   :  { %1133 = vrot.lane.b32.xlu0 %v2437_v63, %s2123_s18 }
0x10ac   :  { %v1136_v0 = vpop.permute.xlu1 %1135 }
0x10ad   :  { %v1134_v56 = vpop.permute.xlu0 %1133 }
0x10ae   :  { %1832 = vmatprep.mubr.msk.f32.mxu1 %vm45_vm0, %v1134_v56 }
0x10af   :  { %1833 = vmatmul.mubr.msk.f32.vlgmr.msra.gmra.mrb[12].mxu1 %vm45_vm0, %v1136_v0 }
0x1182   :  { %v1834_v1 = vpop.f32.mrb[12].mxu1 }
0x1183   :  { %v1219_v2 = vrot.slane %v1834_v1, 4  ;;  %v1207_v3 = vpop.f32.mrb[13].mxu1 }
0x1184   :  { %v1218_v4 = vrot.slane %v1207_v3, 4 }
0x1186   :  { %v1220_v6 = vsel %vm591_vm4, %v1218_v4, %v1219_v2  ;;  %v1223_v7 = vadd.f32 %v1218_v4, %v2419_v17 }
0x1187   :  { %v1224_v8 = vadd.f32 %v1220_v6, %v2445_v5 }
0x1188   :  { %2048 = vtanh.f32 %v1223_v7  ;;  %v1652_v12 = vmul.f32 -1.442695, %v1223_v7 }
0x1189   :  { %2050 = vtanh.f32 %v1224_v8  ;;  %v1653_v13 = vmul.f32 -1.442695, %v1224_v8 }
0x118a   :  { %2052 = vpow2.f32 %v1652_v12 }
0x118b   :  { %2054 = vpow2.f32 %v1653_v13 }
0x1192   :  { %v2049_v9 = vpop.eup %2048 }
0x1193   :  { %v2051_v11 = vpop.eup %2050  ;;  %1250 = vrot.lane.b32.xlu0 %v2049_v9, %s2122_s17 }
0x1194   :  { %1252 = vrot.lane.b32.xlu1 %v2051_v11, %s2122_s17  ;;  %v2053_v21 = vpop.eup %2052 }
0x1195   :  { %v2055_v15 = vpop.eup %2054  ;;  %v1231_v20 = vadd.f32 1.0, %v2053_v21 }
0x1196   :  { %v1232_v14 = vadd.f32 1.0, %v2055_v15 }
0x1197   :  { %2056 = vrcp.f32 %v1231_v20 }
0x1198   :  { %2058 = vrcp.f32 %v1232_v14 }
0x11a1   :  { %v2057_v17 = vpop.eup %2056 }
0x11a2   :  { %v2059_v26 = vpop.eup %2058  ;;  %v1246_v41 = vmul.f32 %v2057_v17, %v1241_v51 }
0x11a3   :  { %v1247_v33 = vmul.f32 %v2059_v26, %v1243_v53 }
0x1205   :  { %v1251_v18 = vpop.permute.xlu0 %1250 }
0x1206   :  { %v1256_v27 = vmul.f32 %v2057_v17, %v1251_v18  ;;  %v1253_v22 = vpop.permute.xlu1 %1252 }
0x1207   :  { %v1257_v30 = vmul.f32 %v2059_v26, %v1253_v22 }
0x1208   :  { %1260 = vrot.lane.b32.xlu0 %v1256_v27, %s2123_s18 }
0x1209   :  { %1262 = vrot.lane.b32.xlu1 %v1257_v30, %s2123_s18 }
0x127a   :  { %v1261_v31 = vpop.permute.xlu0 %1260 }
0x127b   :  { %v1266_v34 = vadd.f32 %v1261_v31, %v1246_v41  ;;  %v1263_v32 = vpop.permute.xlu1 %1262 }
0x127c   :  { %v1267_v35 = vadd.f32 %v1263_v32, %v1247_v33 }
0x127d   :  { %2060 = vtanh.f32 %v1266_v34  ;;  %v1401_v36 = vrot.slane %v1266_v34, 6 }
0x127e   :  { %2062 = vtanh.f32 %v1267_v35  ;;  %v1402_v40 = vrot.slane %v1267_v35, 6 }
0x1280   :  { %v1403_v43 = vsel %vm427_vm1, %v1401_v36, %v1402_v40 }
0x1287   :  { %v2061_v44 = vpop.eup %2060 }
0x1288   :  { %v2063_v45 = vpop.eup %2062  ;;  %1272 = vrot.lane.b32.xlu0 %v2061_v44, %s2122_s17 }
0x1289   :  { %1274 = vrot.lane.b32.xlu1 %v2063_v45, %s2122_s17 }
0x12fa   :  { %v1273_v46 = vpop.permute.xlu0 %1272 }
0x12fb   :  { %v1278_v42 = vmul.f32 %v2057_v17, %v1273_v46  ;;  %v1275_v47 = vpop.permute.xlu1 %1274 }
0x12fc   :  { %v1279_v39 = vmul.f32 %v2059_v26, %v1275_v47 }
0x12fd   :  { %v1282_v50 = vrot.slane %v1278_v42, 4 }
0x12fe   :  { %v2457_v51 = vrot.slane %v1279_v39, 4 }
0x1300   :  { %1295 = vrot.lane.b32.xlu1 %v2457_v51, %s2123_s18  ;;  %v2463_v52 = vsel %vm591_vm4, %v1282_v50, %v2457_v51 }
0x1301   :  { %1293 = vrot.lane.b32.xlu0 %v2463_v52, %s2123_s18 }
0x1372   :  { %v1296_v54 = vpop.permute.xlu1 %1295 }
0x1373   :  { %v1294_v53 = vpop.permute.xlu0 %1293 }
0x1374   :  { %1843 = vmatprep.mubr.msk.f32.mxu0 %vm45_vm0, %v1294_v53 }
0x1375   :  { %1844 = vmatmul.mubr.msk.f32.vlgmr.msra.gmra.mrb[12].mxu0 %vm45_vm0, %v1296_v54 }
0x1376   :  { %1932 = vmatpush3.bf16.msra.mxu0 %v2178_v10 }
0x1377   :  { %1934 = vmatprep.subr.bf16.mxu0 %v2197_v16 }
0x137a   :  { %1936 = vmatpush3.bf16.msra.mxu0 %v2197_v16 }
0x1448   :  { %v1845_v55 = vpop.f32.mrb[12].mxu0 }
0x1449   :  { %v1379_v57 = vrot.slane %v1845_v55, 2  ;;  %v1367_v58 = vpop.f32.mrb[13].mxu0 }
0x144a   :  { %v1378_v59 = vrot.slane %v1367_v58, 2 }
0x144c   :  { %v1380_v61 = vsel %vm492_vm3, %v1378_v59, %v1379_v57  ;;  %v1383_v56 = vadd.f32 %v1378_v59, %v2445_v5 }
0x144d   :  { %v1384_v0 = vadd.f32 %v1380_v61, %v194_v60 }
0x144e   :  { %2064 = vtanh.f32 %v1383_v56  ;;  %v1656_v16 = vmul.f32 -1.442695, %v1383_v56 }
0x144f   :  { %2066 = vtanh.f32 %v1384_v0  ;;  %v1657_v2 = vmul.f32 -1.442695, %v1384_v0 }
0x1450   :  { %2068 = vpow2.f32 %v1656_v16 }
0x1451   :  { %2070 = vpow2.f32 %v1657_v2 }
0x1458   :  { %v2065_v1 = vpop.eup %2064 }
0x1459   :  { %v2067_v10 = vpop.eup %2066  ;;  %1410 = vrot.lane.b32.xlu0 %v2065_v1, %s2122_s17 }
0x145a   :  { %1412 = vrot.lane.b32.xlu1 %v2067_v10, %s2122_s17  ;;  %v2069_v3 = vpop.eup %2068 }
0x145b   :  { %v2071_v4 = vpop.eup %2070  ;;  %v1391_v19 = vadd.f32 1.0, %v2069_v3 }
0x145c   :  { %v1392_v24 = vadd.f32 1.0, %v2071_v4 }
0x145d   :  { %2072 = vrcp.f32 %v1391_v19 }
0x145e   :  { %2074 = vrcp.f32 %v1392_v24 }
0x1467   :  { %v2073_v5 = vpop.eup %2072 }
0x1468   :  { %v2075_v7 = vpop.eup %2074  ;;  %v1406_v12 = vmul.f32 %v2073_v5, %v1401_v36 }
0x1469   :  { %v1407_v21 = vmul.f32 %v2075_v7, %v1403_v43  ;;  %v2096_v43 = vld [vmem:[%s2541_s3] ss:$0 sm:$0xff]  ;;  %s2124_s3 = smov 96  }
0x146a   :  { %v204_v44 = vadd.f32 %v2096_v43, %v2223_v23  ;;  %v199_v45 = vadd.f32 %v2096_v43, %v2230_v25 }
0x14cb   :  { %v1411_v6 = vpop.permute.xlu0 %1410 }
0x14cc   :  { %v1416_v8 = vmul.f32 %v2073_v5, %v1411_v6  ;;  %v1413_v9 = vpop.permute.xlu1 %1412 }
0x14cd   :  { %v1417_v11 = vmul.f32 %v2075_v7, %v1413_v9 }
0x14ce   :  { %1420 = vrot.lane.b32.xlu0 %v1416_v8, %s2123_s18 }
0x14cf   :  { %1422 = vrot.lane.b32.xlu1 %v1417_v11, %s2123_s18 }
0x1540   :  { %v1421_v13 = vpop.permute.xlu0 %1420 }
0x1541   :  { %v1426_v15 = vadd.f32 %v1421_v13, %v1406_v12  ;;  %v1423_v20 = vpop.permute.xlu1 %1422 }
0x1542   :  { %v1427_v14 = vadd.f32 %v1423_v20, %v1407_v21 }
0x1543   :  { %2076 = vtanh.f32 %v1426_v15  ;;  %v1550_v17 = vrot.slane %v1426_v15, 6 }
0x1544   :  { %2078 = vtanh.f32 %v1427_v14  ;;  %v1551_v18 = vrot.slane %v1427_v14, 6 }
0x1546   :  { %v1552_v26 = vsel %vm427_vm1, %v1550_v17, %v1551_v18 }
0x154d   :  { %v2077_v27 = vpop.eup %2076 }
0x154e   :  { %v2079_v22 = vpop.eup %2078  ;;  %1432 = vrot.lane.b32.xlu0 %v2077_v27, %s2122_s17 }
0x154f   :  { %1434 = vrot.lane.b32.xlu1 %v2079_v22, %s2122_s17 }
0x15c0   :  { %v1433_v30 = vpop.permute.xlu0 %1432 }
0x15c1   :  { %v1438_v41 = vmul.f32 %v2073_v5, %v1433_v30  ;;  %v1435_v31 = vpop.permute.xlu1 %1434 }
0x15c2   :  { %v1439_v33 = vmul.f32 %v2075_v7, %v1435_v31 }
0x15c3   :  { %v1442_v34 = vrot.slane %v1438_v41, 6 }
0x15c4   :  { %v2483_v32 = vrot.slane %v1439_v33, 6 }
0x15c6   :  { %1451 = vrot.lane.b32.xlu1 %v2483_v32, %s2123_s18  ;;  %v2489_v35 = vsel %vm427_vm1, %v1442_v34, %v2483_v32 }
0x15c7   :  { %1449 = vrot.lane.b32.xlu0 %v2489_v35, %s2123_s18 }
0x1638   :  { %v1452_v40 = vpop.permute.xlu1 %1451 }
0x1639   :  { %v1450_v36 = vpop.permute.xlu0 %1449 }
0x163a   :  { %1854 = vmatprep.mubr.msk.f32.mxu0 %vm45_vm0, %v1450_v36 }
0x163b   :  { %1855 = vmatmul.mubr.msk.f32.vlgmr.msra.gmra.mrb[14].mxu0 %vm45_vm0, %v1452_v40 }
0x170e   :  { %v1856_v46 = vpop.f32.mrb[14].mxu0 }
0x170f   :  { %v1533_v42 = vadd.f32 %v1856_v46, %v204_v44  ;;  %v1523_v47 = vpop.f32.mrb[15].mxu0 }
0x1710   :  { %v1532_v39 = vadd.f32 %v1523_v47, %v199_v45 }
0x1711   :  { %2080 = vtanh.f32 %v1533_v42  ;;  %v1661_v54 = vmul.f32 -1.442695, %v1533_v42 }
0x1712   :  { %2082 = vtanh.f32 %v1532_v39  ;;  %v1660_v55 = vmul.f32 -1.442695, %v1532_v39 }
0x1713   :  { %2084 = vpow2.f32 %v1661_v54 }
0x1714   :  { %2086 = vpow2.f32 %v1660_v55 }
0x171b   :  { %v2081_v50 = vpop.eup %2080 }
0x171c   :  { %v2083_v53 = vpop.eup %2082  ;;  %1561 = vrot.lane.b32.xlu1 %v2081_v50, %s2122_s17 }
0x171d   :  { %1559 = vrot.lane.b32.xlu0 %v2083_v53, %s2122_s17  ;;  %v2085_v57 = vpop.eup %2084 }
0x171e   :  { %v2087_v23 = vpop.eup %2086  ;;  %v1541_v58 = vadd.f32 1.0, %v2085_v57 }
0x171f   :  { %v1540_v25 = vadd.f32 1.0, %v2087_v23 }
0x1720   :  { %2088 = vrcp.f32 %v1541_v58 }
0x1721   :  { %2090 = vrcp.f32 %v1540_v25 }
0x172a   :  { %v2089_v59 = vpop.eup %2088 }
0x172b   :  { %v2091_v61 = vpop.eup %2090  ;;  %v1556_v10 = vmul.f32 %v2089_v59, %v1551_v18 }
0x172c   :  { %v1555_v2 = vmul.f32 %v2091_v61, %v1552_v26 }
0x178e   :  { %v1562_v60 = vpop.permute.xlu1 %1561 }
0x178f   :  { %v1566_v56 = vmul.f32 %v2089_v59, %v1562_v60  ;;  %v1560_v0 = vpop.permute.xlu0 %1559 }
0x1790   :  { %v1565_v1 = vmul.f32 %v2091_v61, %v1560_v0 }
0x1791   :  { %1571 = vrot.lane.b32.xlu1 %v1566_v56, %s2123_s18 }
0x1792   :  { %1569 = vrot.lane.b32.xlu0 %v1565_v1, %s2123_s18 }
0x1803   :  { %v1572_v16 = vpop.permute.xlu1 %1571 }
0x1804   :  { %v1576_v3 = vadd.f32 %v1572_v16, %v1556_v10  ;;  %v1570_v4 = vpop.permute.xlu0 %1569 }
0x1805   :  { %v1575_v19 = vadd.f32 %v1570_v4, %v1555_v2 }
0x1806   :  { %2092 = vtanh.f32 %v1576_v3 }
0x1807   :  { %2094 = vtanh.f32 %v1575_v19 }
0x1810   :  { %v2093_v24 = vpop.eup %2092 }
0x1811   :  { %v2095_v5 = vpop.eup %2094  ;;  %1583 = vrot.lane.b32.xlu1 %v2093_v24, %s2122_s17 }
0x1812   :  { %1581 = vrot.lane.b32.xlu0 %v2095_v5, %s2122_s17 }
0x1815   :  { %498 = vrot.lane.b32.xlu1 %v2289_v48, %s2122_s17 }
0x1816   :  { %496 = vrot.lane.b32.xlu0 %v2295_v49, %s2122_s17 }
0x1819   :  { %1127 = vrot.lane.b32.xlu1 %v2431_v62, %s2122_s17 }
0x181a   :  { %1125 = vrot.lane.b32.xlu0 %v2437_v63, %s2122_s17 }
0x181d   :  { %661 = vrot.lane.b32.xlu1 %v2343_v37, %s2124_s3 }
0x181e   :  { %659 = vrot.lane.b32.xlu0 %v2349_v38, %s2124_s3 }
0x1821   :  { %1287 = vrot.lane.b32.xlu1 %v2457_v51, %s2124_s3 }
0x1822   :  { %1285 = vrot.lane.b32.xlu0 %v2463_v52, %s2124_s3 }
0x1883   :  { %v1584_v6 = vpop.permute.xlu1 %1583 }
0x1884   :  { %v1588_v48 = vmul.f32 %v2089_v59, %v1584_v6  ;;  %v1582_v7 = vpop.permute.xlu0 %1581 }
0x1885   :  { %v1587_v8 = vmul.f32 %v2091_v61, %v1582_v7 }
0x1886   :  { %1593 = vrot.lane.b32.xlu1 %v1588_v48, %s2123_s18 }
0x1887   :  { %v499_v49 = vpop.permute.xlu1 %498  ;;  %1591 = vrot.lane.b32.xlu0 %v1587_v8, %s2123_s18 }
0x1888   :  { %505 = vst.msk [vmem:[#allocation2 + $0x18] sm:$0x3] %vm504_vm5, %v499_v49  ;;  %v497_v62 = vpop.permute.xlu0 %496 }
0x1889   :  { %503 = vst.msk [vmem:[#allocation2] sm:$0xff] %vm502_vm6, %v497_v62 }
0x188b   :  { %v1128_v37 = vpop.permute.xlu1 %1127 }
0x188c   :  { %1132 = vst.msk [vmem:[#allocation2 + $0x20] sm:$0x3] %vm504_vm5, %v1128_v37  ;;  %v1126_v38 = vpop.permute.xlu0 %1125 }
0x188d   :  { %1131 = vst.msk [vmem:[#allocation2 + $0x8] sm:$0xff] %vm502_vm6, %v1126_v38 }
0x188f   :  { %v662_v63 = vpop.permute.xlu1 %661 }
0x1890   :  { %668 = vst.msk [vmem:[#allocation2 + $0x18] sm:$0x3] %vm667_vm7, %v662_v63  ;;  %v660_v51 = vpop.permute.xlu0 %659 }
0x1891   :  { %826 = vst.msk [vmem:[#allocation2 + $0x18] sm:$0x3] %vm825_vm8, %v2378_v28 }
0x1892   :  { %666 = vst.msk [vmem:[#allocation2] sm:$0xff] %vm665_vm9, %v660_v51 }
0x1893   :  { %824 = vst.msk [vmem:[#allocation2] sm:$0xff] %vm823_vm10, %v2384_v29  ;;  %v1288_v52 = vpop.permute.xlu1 %1287 }
0x1894   :  { %1292 = vst.msk [vmem:[#allocation2 + $0x20] sm:$0x3] %vm667_vm7, %v1288_v52  ;;  %v1286_v9 = vpop.permute.xlu0 %1285 }
0x1895   :  { %1448 = vst.msk [vmem:[#allocation2 + $0x20] sm:$0x3] %vm825_vm8, %v2483_v32 }
0x1896   :  { %1291 = vst.msk [vmem:[#allocation2 + $0x8] sm:$0xff] %vm665_vm9, %v1286_v9 }
0x1897   :  { %1447 = vst.msk [vmem:[#allocation2 + $0x8] sm:$0xff] %vm823_vm10, %v2489_v35 }
0x18f8   :  { %v1594_v11 = vpop.permute.xlu1 %1593 }
0x18f9   :  { %1598 = vst.msk [vmem:[#allocation2 + $0x28] sm:$0x3] %vm344_vm2, %v1594_v11  ;;  %v1592_v12 = vpop.permute.xlu0 %1591 }
0x18fa   :  { %1597 = vst.msk [vmem:[#allocation2 + $0x10] sm:$0xff] %vm45_vm0, %v1592_v12 }
0x18fb   :  { %2108 = shalt.err (!%p2105_p4)
}
0x18fc   :  { %s2109_s10 = scalar_lea.hbm %s2542_s4, 768 }
0x18fd   :  { %p2110_p5 = scmp.ne.s32.totalorder %s2542_s4, %s2109_s10  ;;  %p2113_p6 = scmp.lt.u32.totalorder %s2109_s10, %s2542_s4 }
0x18ff   :  { %p2115_p7 = pnand %p2113_p6, %p2110_p5 }
0x1901   :  { %2118 = shalt.err (!%p2115_p7)
}
0x1902   :  { %s2126_s14 = smov 384   ;;  %s2127_s15 = smov 24  }
0x1903   :  { %1610 = dma.vmem_to_hbm [thread:$0]  %s1605_s6, 768, %s2542_s4, [#allocation3], %s2126_s14, %s2126_s14, %s2127_s15  }
0x1904   :  { %2119 = dma.done.wait [#allocation3], 768  }
0x1905   :  { %2120 = vsyncadd [#allocation3], 4294966528 }
0x1906   :  { %1614 = vsyncpa [#allocation3], 1 }

</bundles_post_ra>
